<compile_context>
chip_gen: v5e
topology: v5e:2x2
jax: 0.10.0
libtpu: 0.0.40
codegen_flags: <defaults>
</compile_context>

<pallas_src>
import jax
import jax.numpy as jnp
from jax.experimental import pallas as pl
from jax.experimental.pallas import tpu as pltpu

LANE = 128     # lane width: pad the narrow n_class output dim up to a full lane
SUBLANE = 8    # minimum sublane granularity for the batch tile
TB_MAX = 512   # max batch-tile rows per grid step (review: 512 amortizes step overhead)


def _leaky_relu(x, slope=0.2):
    return jnp.where(x > 0, x, slope * x)


def _round_up(n, m):
    return ((n + m - 1) // m) * m


def _choose_tb(b, tb_max=TB_MAX):
    """Even-split batch tiling.

    Minimizes padding for awkward B and keeps the grid >= 2 steps whenever the
    batch allows so ("parallel",) semantics can use both TensorCores on v7x.
    """
    n_steps = pl.cdiv(b, tb_max)
    if n_steps == 1 and b >= 2 * SUBLANE:
        n_steps = 2                       # v7x megacore: give each core a step
    return _round_up(pl.cdiv(b, n_steps), SUBLANE)


# --------------------------------------------------------------------------- #
# Kernel: whole MLP fused, weights VMEM-resident, batch-tiled grid.
# --------------------------------------------------------------------------- #
def generator_kernel(x_ref,
                     w1_ref, b1_ref,
                     w2_ref, b2_ref,
                     w3_ref, b3_ref,
                     w4_ref, b4_ref,
                     o_ref):
    # Weights are bf16 (native MXU path); matmuls accumulate in f32, the bias
    # add happens in f32, then we downcast and run leaky_relu in bf16 (v6e/v7x
    # VALUs are bf16-capable -> half the vreg traffic between matmuls).
    h = x_ref[...].astype(jnp.bfloat16)                                   # (TB, 32)

    h = jnp.dot(h, w1_ref[...], preferred_element_type=jnp.float32) + b1_ref[...]
    h = _leaky_relu(h.astype(jnp.bfloat16))                               # (TB, 256)

    h = jnp.dot(h, w2_ref[...], preferred_element_type=jnp.float32) + b2_ref[...]
    h = _leaky_relu(h.astype(jnp.bfloat16))                               # (TB, 512)

    h = jnp.dot(h, w3_ref[...], preferred_element_type=jnp.float32) + b3_ref[...]
    h = _leaky_relu(h.astype(jnp.bfloat16))                               # (TB, 1024)

    h = jnp.dot(h, w4_ref[...], preferred_element_type=jnp.float32) + b4_ref[...]
    # tanh output lives in [-1, 1]: store bf16 -> half the lane-dense writeback.
    o_ref[...] = jnp.tanh(h).astype(o_ref.dtype)                          # (TB, 128)


# --------------------------------------------------------------------------- #
# One-time weight preparation (hoisted out of the forward, per review).
# --------------------------------------------------------------------------- #
def prepare_params(params):
    """Cast w1..w4 to bf16 and zero-pad the last layer to 128 columns.

    Call ONCE per parameter set and reuse the result for every forward call;
    doing this per-call was the dominant HBM cost at small batch.
    """
    n_class = params["w4"].shape[1]
    n_pad = _round_up(n_class, LANE)
    w4 = jnp.pad(params["w4"], ((0, 0), (0, n_pad - n_class)))
    b4 = jnp.pad(params["b4"], ((0, 0), (0, n_pad - n_class)))
    return {
        "w1": params["w1"].astype(jnp.bfloat16), "b1": params["b1"],
        "w2": params["w2"].astype(jnp.bfloat16), "b2": params["b2"],
        "w3": params["w3"].astype(jnp.bfloat16), "b3": params["b3"],
        "w4": w4.astype(jnp.bfloat16),           "b4": b4,
    }


def generator_forward(x, prep, n_class=10, *, tb_max=TB_MAX):
    """x: (B, input_size) f32.  prep: output of prepare_params().
    Returns (B, n_class) f32."""
    B, d_in = x.shape
    n_pad = prep["w4"].shape[1]            # n_class padded up to a full lane (128)

    tb = _choose_tb(B, tb_max)
    b_pad = _round_up(B, tb)
    if b_pad != B:
        x = jnp.pad(x, ((0, b_pad - B), (0, 0)))

    args = (x,
            prep["w1"], prep["b1"], prep["w2"], prep["b2"],
            prep["w3"], prep["b3"], prep["w4"], prep["b4"])

    # Weights / biases: constant index_map -> DMA'd into VMEM once, resident
    # across all grid steps.  Default double-buffering of the ~1.6 MiB of bf16
    # weights costs ~1.6 MiB extra VMEM, comfortably within budget even on
    # v7x's 64 MiB, so we keep the portable default rather than forcing
    # single-buffering via pipeline_mode.
    def const_spec(a):
        return pl.BlockSpec(a.shape, lambda i: (0, 0))

    in_specs = [pl.BlockSpec((tb, d_in), lambda i: (i, 0))]
    in_specs += [const_spec(a) for a in args[1:]]
    out_specs = pl.BlockSpec((tb, n_pad), lambda i: (i, 0))

    flops = 2 * b_pad * (d_in * 256 + 256 * 512 + 512 * 1024 + 1024 * n_pad)
    bytes_accessed = (sum(int(prep[f"w{i}"].size) * 2 for i in range(1, 5))   # bf16 weights
                      + sum(int(prep[f"b{i}"].size) * 4 for i in range(1, 5)) # f32 biases
                      + b_pad * d_in * 4                                      # f32 input
                      + b_pad * n_pad * 2)                                    # bf16 output
    cost = pl.CostEstimate(flops=flops,
                           transcendentals=b_pad * n_pad,
                           bytes_accessed=bytes_accessed)

    # TODO(synk): at the deployed tiny batch (B~8) the kernel is bound by the
    # ~1.5 MiB weight fetch (worst on v5e); hide it with cross-call weight
    # prefetch (P10) or by batching several generator invocations per call.
    out = pl.pallas_call(
        generator_kernel,
        out_shape=jax.ShapeDtypeStruct((b_pad, n_pad), jnp.bfloat16),
        grid=(b_pad // tb,),
        in_specs=in_specs,
        out_specs=out_specs,
        compiler_params=pltpu.CompilerParams(
            dimension_semantics=("parallel",),   # megacore: both TCs on v7x
            vmem_limit_bytes=32 << 20,           # covers tb=512 f32 intermediates
        ),
        cost_estimate=cost,
    )(*args)

    return out[:B, :n_class].astype(jnp.float32)


# --------------------------------------------------------------------------- #
# Reference / init / test harness
# --------------------------------------------------------------------------- #
def init_params(key, input_size=32, n_class=10):
    """Deterministic synthetic init (shapes match the PyTorch module), f32."""
    dims = [input_size, 256, 512, 1024, n_class]
    params = {}
    keys = jax.random.split(key, 2 * (len(dims) - 1))
    for i, (din, dout) in enumerate(zip(dims[:-1], dims[1:]), start=1):
        bound = 1.0 / (din ** 0.5)  # PyTorch-style U(-1/sqrt(din), 1/sqrt(din))
        params[f"w{i}"] = jax.random.uniform(
            keys[2 * (i - 1)], (din, dout), jnp.float32, -bound, bound)
        params[f"b{i}"] = jax.random.uniform(
            keys[2 * (i - 1) + 1], (1, dout), jnp.float32, -bound, bound)
    return params


def reference_forward(x, params):
    h = x
    for i in range(1, 4):
        h = _leaky_relu(h @ params[f"w{i}"] + params[f"b{i}"])
    return jnp.tanh(h @ params["w4"] + params["b4"])


if __name__ == "__main__":
    key = jax.random.PRNGKey(0)
    k_x, k_p = jax.random.split(key)

    B, INPUT_SIZE, N_CLASS = 8, 32, 10
    x = jax.random.normal(k_x, (B, INPUT_SIZE), jnp.float32)
    params = init_params(k_p, INPUT_SIZE, N_CLASS)

    prep = prepare_params(params)   # one-time weight prep; reuse across calls
    out = jax.block_until_ready(generator_forward(x, prep, N_CLASS))
    ref = reference_forward(x, params)

    assert out.shape == (B, N_CLASS), out.shape
    max_err = float(jnp.max(jnp.abs(out - ref)))
    # bf16 matmul path + bf16 output store vs f32 reference -> loosened tolerance
    assert max_err < 5e-2, max_err

    print("KERNEL_OK")
</pallas_src>

<mosaic_0001>
module attributes {stable_mosaic.version = 11 : i64} {
  func.func @generator_kernel(%arg0: i32, %arg1: memref<8x32xf32, #tpu.memory_space<vmem>>, %arg2: memref<32x256xbf16, #tpu.memory_space<vmem>>, %arg3: memref<1x256xf32, #tpu.memory_space<vmem>>, %arg4: memref<256x512xbf16, #tpu.memory_space<vmem>>, %arg5: memref<1x512xf32, #tpu.memory_space<vmem>>, %arg6: memref<512x1024xbf16, #tpu.memory_space<vmem>>, %arg7: memref<1x1024xf32, #tpu.memory_space<vmem>>, %arg8: memref<1024x128xbf16, #tpu.memory_space<vmem>>, %arg9: memref<1x128xf32, #tpu.memory_space<vmem>>, %arg10: memref<8x128xbf16, #tpu.memory_space<vmem>>) attributes {dimension_semantics = [#tpu.dimension_semantics<parallel>], iteration_bounds = array<i64: 1>, scalar_prefetch = 0 : i64, scratch_operands = 0 : i64, tpu.core_type = #tpu.core_type<tc>, window_params = [{transform_indices = @transform_0, window_bounds = array<i64: 8, 32>}, {pipeline_mode = #tpu.pipeline_mode<synchronous>, transform_indices = @transform_1, window_bounds = array<i64: 32, 256>}, {pipeline_mode = #tpu.pipeline_mode<synchronous>, transform_indices = @transform_2, window_bounds = array<i64: 1, 256>}, {pipeline_mode = #tpu.pipeline_mode<synchronous>, transform_indices = @transform_3, window_bounds = array<i64: 256, 512>}, {pipeline_mode = #tpu.pipeline_mode<synchronous>, transform_indices = @transform_4, window_bounds = array<i64: 1, 512>}, {pipeline_mode = #tpu.pipeline_mode<synchronous>, transform_indices = @transform_5, window_bounds = array<i64: 512, 1024>}, {pipeline_mode = #tpu.pipeline_mode<synchronous>, transform_indices = @transform_6, window_bounds = array<i64: 1, 1024>}, {pipeline_mode = #tpu.pipeline_mode<synchronous>, transform_indices = @transform_7, window_bounds = array<i64: 1024, 128>}, {pipeline_mode = #tpu.pipeline_mode<synchronous>, transform_indices = @transform_8, window_bounds = array<i64: 1, 128>}, {transform_indices = @transform_9, window_bounds = array<i64: 8, 128>}]} {
    %c0 = arith.constant 0 : index
    %c0_0 = arith.constant 0 : index
    %0 = vector.load %arg1[%c0, %c0_0] : memref<8x32xf32, #tpu.memory_space<vmem>>, vector<8x32xf32>
    %1 = arith.truncf %0 : vector<8x32xf32> to vector<8x32xbf16>
    %c0_1 = arith.constant 0 : index
    %c0_2 = arith.constant 0 : index
    %2 = vector.load %arg2[%c0_1, %c0_2] : memref<32x256xbf16, #tpu.memory_space<vmem>>, vector<32x256xbf16>
    %cst = arith.constant dense<0.000000e+00> : vector<8x256xf32>
    %3 = tpu.matmul %1, %2, %cst {dimension_numbers = #tpu.dot_dimension_numbers<[1], [0], [0], [1], [0, 0, 1, 1], [], []>} : vector<8x32xbf16>, vector<32x256xbf16>, vector<8x256xf32> -> vector<8x256xf32>
    %c0_3 = arith.constant 0 : index
    %c0_4 = arith.constant 0 : index
    %4 = vector.load %arg3[%c0_3, %c0_4] : memref<1x256xf32, #tpu.memory_space<vmem>>, vector<1x256xf32>
    %5 = vector.broadcast %4 : vector<1x256xf32> to vector<8x256xf32>
    %6 = arith.addf %3, %5 : vector<8x256xf32>
    %7 = arith.truncf %6 : vector<8x256xf32> to vector<8x256xbf16>
    %cst_5 = arith.constant 0.000000e+00 : bf16
    %8 = vector.broadcast %cst_5 : bf16 to vector<8x256xbf16>
    %9 = arith.cmpf ogt, %7, %8 : vector<8x256xbf16>
    %cst_6 = arith.constant 2.001950e-01 : bf16
    %10 = vector.broadcast %cst_6 : bf16 to vector<8x256xbf16>
    %11 = arith.mulf %10, %7 : vector<8x256xbf16>
    %12 = arith.select %9, %7, %11 : vector<8x256xi1>, vector<8x256xbf16>
    %c0_7 = arith.constant 0 : index
    %c0_8 = arith.constant 0 : index
    %13 = vector.load %arg4[%c0_7, %c0_8] : memref<256x512xbf16, #tpu.memory_space<vmem>>, vector<256x512xbf16>
    %cst_9 = arith.constant dense<0.000000e+00> : vector<8x512xf32>
    %14 = tpu.matmul %12, %13, %cst_9 {dimension_numbers = #tpu.dot_dimension_numbers<[1], [0], [0], [1], [0, 0, 1, 1], [], []>} : vector<8x256xbf16>, vector<256x512xbf16>, vector<8x512xf32> -> vector<8x512xf32>
    %c0_10 = arith.constant 0 : index
    %c0_11 = arith.constant 0 : index
    %15 = vector.load %arg5[%c0_10, %c0_11] : memref<1x512xf32, #tpu.memory_space<vmem>>, vector<1x512xf32>
    %16 = vector.broadcast %15 : vector<1x512xf32> to vector<8x512xf32>
    %17 = arith.addf %14, %16 : vector<8x512xf32>
    %18 = arith.truncf %17 : vector<8x512xf32> to vector<8x512xbf16>
    %cst_12 = arith.constant 0.000000e+00 : bf16
    %19 = vector.broadcast %cst_12 : bf16 to vector<8x512xbf16>
    %20 = arith.cmpf ogt, %18, %19 : vector<8x512xbf16>
    %cst_13 = arith.constant 2.001950e-01 : bf16
    %21 = vector.broadcast %cst_13 : bf16 to vector<8x512xbf16>
    %22 = arith.mulf %21, %18 : vector<8x512xbf16>
    %23 = arith.select %20, %18, %22 : vector<8x512xi1>, vector<8x512xbf16>
    %c0_14 = arith.constant 0 : index
    %c0_15 = arith.constant 0 : index
    %24 = vector.load %arg6[%c0_14, %c0_15] : memref<512x1024xbf16, #tpu.memory_space<vmem>>, vector<512x1024xbf16>
    %cst_16 = arith.constant dense<0.000000e+00> : vector<8x1024xf32>
    %25 = tpu.matmul %23, %24, %cst_16 {dimension_numbers = #tpu.dot_dimension_numbers<[1], [0], [0], [1], [0, 0, 1, 1], [], []>} : vector<8x512xbf16>, vector<512x1024xbf16>, vector<8x1024xf32> -> vector<8x1024xf32>
    %c0_17 = arith.constant 0 : index
    %c0_18 = arith.constant 0 : index
    %26 = vector.load %arg7[%c0_17, %c0_18] : memref<1x1024xf32, #tpu.memory_space<vmem>>, vector<1x1024xf32>
    %27 = vector.broadcast %26 : vector<1x1024xf32> to vector<8x1024xf32>
    %28 = arith.addf %25, %27 : vector<8x1024xf32>
    %29 = arith.truncf %28 : vector<8x1024xf32> to vector<8x1024xbf16>
    %cst_19 = arith.constant 0.000000e+00 : bf16
    %30 = vector.broadcast %cst_19 : bf16 to vector<8x1024xbf16>
    %31 = arith.cmpf ogt, %29, %30 : vector<8x1024xbf16>
    %cst_20 = arith.constant 2.001950e-01 : bf16
    %32 = vector.broadcast %cst_20 : bf16 to vector<8x1024xbf16>
    %33 = arith.mulf %32, %29 : vector<8x1024xbf16>
    %34 = arith.select %31, %29, %33 : vector<8x1024xi1>, vector<8x1024xbf16>
    %c0_21 = arith.constant 0 : index
    %c0_22 = arith.constant 0 : index
    %35 = vector.load %arg8[%c0_21, %c0_22] : memref<1024x128xbf16, #tpu.memory_space<vmem>>, vector<1024x128xbf16>
    %cst_23 = arith.constant dense<0.000000e+00> : vector<8x128xf32>
    %36 = tpu.matmul %34, %35, %cst_23 {dimension_numbers = #tpu.dot_dimension_numbers<[1], [0], [0], [1], [0, 0, 1, 1], [], []>} : vector<8x1024xbf16>, vector<1024x128xbf16>, vector<8x128xf32> -> vector<8x128xf32>
    %c0_24 = arith.constant 0 : index
    %c0_25 = arith.constant 0 : index
    %37 = vector.load %arg9[%c0_24, %c0_25] : memref<1x128xf32, #tpu.memory_space<vmem>>, vector<1x128xf32>
    %38 = vector.broadcast %37 : vector<1x128xf32> to vector<8x128xf32>
    %39 = arith.addf %36, %38 : vector<8x128xf32>
    %40 = math.tanh %39 : vector<8x128xf32>
    %41 = arith.truncf %40 : vector<8x128xf32> to vector<8x128xbf16>
    %c0_26 = arith.constant 0 : index
    %c0_27 = arith.constant 0 : index
    %42 = vector.load %arg10[%c0_26, %c0_27] : memref<8x128xbf16, #tpu.memory_space<vmem>>, vector<8x128xbf16>
    tpu.vector_store %arg10[%c0_26, %c0_27], %41 {strides = array<i32>} : memref<8x128xbf16, #tpu.memory_space<vmem>>, vector<8x128xbf16>,
    return
  }
  func.func @transform_0(%arg0: i32) -> (i32, i32) {
    %c0_i32 = arith.constant 0 : i32
    %c0_i32_0 = arith.constant 0 : i32
    return %arg0, %c0_i32 : i32, i32
  }
  func.func @transform_1(%arg0: i32) -> (i32, i32) {
    %c0_i32 = arith.constant 0 : i32
    %c0_i32_0 = arith.constant 0 : i32
    %c0_i32_1 = arith.constant 0 : i32
    return %c0_i32, %c0_i32_0 : i32, i32
  }
  func.func @transform_2(%arg0: i32) -> (i32, i32) {
    %c0_i32 = arith.constant 0 : i32
    %c0_i32_0 = arith.constant 0 : i32
    %c0_i32_1 = arith.constant 0 : i32
    return %c0_i32, %c0_i32_0 : i32, i32
  }
  func.func @transform_3(%arg0: i32) -> (i32, i32) {
    %c0_i32 = arith.constant 0 : i32
    %c0_i32_0 = arith.constant 0 : i32
    %c0_i32_1 = arith.constant 0 : i32
    return %c0_i32, %c0_i32_0 : i32, i32
  }
  func.func @transform_4(%arg0: i32) -> (i32, i32) {
    %c0_i32 = arith.constant 0 : i32
    %c0_i32_0 = arith.constant 0 : i32
    %c0_i32_1 = arith.constant 0 : i32
    return %c0_i32, %c0_i32_0 : i32, i32
  }
  func.func @transform_5(%arg0: i32) -> (i32, i32) {
    %c0_i32 = arith.constant 0 : i32
    %c0_i32_0 = arith.constant 0 : i32
    %c0_i32_1 = arith.constant 0 : i32
    return %c0_i32, %c0_i32_0 : i32, i32
  }
  func.func @transform_6(%arg0: i32) -> (i32, i32) {
    %c0_i32 = arith.constant 0 : i32
    %c0_i32_0 = arith.constant 0 : i32
    %c0_i32_1 = arith.constant 0 : i32
    return %c0_i32, %c0_i32_0 : i32, i32
  }
  func.func @transform_7(%arg0: i32) -> (i32, i32) {
    %c0_i32 = arith.constant 0 : i32
    %c0_i32_0 = arith.constant 0 : i32
    %c0_i32_1 = arith.constant 0 : i32
    return %c0_i32, %c0_i32_0 : i32, i32
  }
  func.func @transform_8(%arg0: i32) -> (i32, i32) {
    %c0_i32 = arith.constant 0 : i32
    %c0_i32_0 = arith.constant 0 : i32
    %c0_i32_1 = arith.constant 0 : i32
    return %c0_i32, %c0_i32_0 : i32, i32
  }
  func.func @transform_9(%arg0: i32) -> (i32, i32) {
    %c0_i32 = arith.constant 0 : i32
    %c0_i32_0 = arith.constant 0 : i32
    return %arg0, %c0_i32 : i32, i32
  }
}

</mosaic_0001>

<bundles_post_ra>
// kernel: tpu_custom_call.1
= control target key start
LH: loop header
LB: loop body
LE: loop exit
PB: predicated region body
PF: predicated region fallthrough
CT: control target
= control target key end

     0   :  { %14 = vsyncpa [#allocation3], 0  ;;  %s5849_s0 = inlined_call_operand.hbm [shape: f32[8,32], index: 0, kind: input, shape index: {}]   ;;  %s5850_s1 = inlined_call_operand.hbm [shape: bf16[32,256], index: 1, kind: input, shape index: {}]   ;;  %s5851_s2 = inlined_call_operand.hbm [shape: f32[1,256], index: 2, kind: input, shape index: {}]   ;;  %s5852_s3 = inlined_call_operand.hbm [shape: bf16[256,512], index: 3, kind: input, shape index: {}]   ;;  %s5853_s4 = inlined_call_operand.hbm [shape: f32[1,512], index: 4, kind: input, shape index: {}]   ;;  %s5854_s5 = inlined_call_operand.hbm [shape: bf16[512,1024], index: 5, kind: input, shape index: {}]   ;;  %s5855_s6 = inlined_call_operand.hbm [shape: f32[1,1024], index: 6, kind: input, shape index: {}]   ;;  %s5856_s7 = inlined_call_operand.hbm [shape: bf16[1024,128], index: 7, kind: input, shape index: {}]   ;;  %s5857_s8 = inlined_call_operand.vmem [shape: f32[1,128], index: 8, kind: input, shape index: {}]   ;;  %s5858_s9 = inlined_call_operand.hbm [shape: bf16[8,128], index: 9, kind: output, shape index: {}]  }
   0x1   :  { %15 = vsyncpa [#allocation6], 0 }
   0x2   :  { %16 = vsyncpa [#allocation9], 0 }
   0x3   :  { %17 = vsyncpa [#allocation12], 0 }
   0x4   :  { %18 = vsyncpa [#allocation15], 0  ;;  %s35_s11 = sshll.u32 %s5850_s1, 4  ;;  %s36_s11 = int_to_ptr.hbm [resolvable:$true] %s35_s11 }
   0x5   :  { %19 = vsyncpa [#allocation4], 0  ;;  %s5634_s12 = smov [#allocation5]   ;;  %s59_s16 = sshll.u32 %s5852_s3, 4  ;;  %s60_s16 = int_to_ptr.hbm [resolvable:$true] %s59_s16 }
   0x6   :  { %s37_s13 = sshll.u32 %s5634_s12, 4  ;;  %s5635_s17 = smov 128   ;;  %s38_s13 = int_to_ptr.vmem [resolvable:$true] %s37_s13 }
   0x7   :  { %s5636_s18 = smov 8   ;;  %s5637_s19 = smov [#allocation8]  }
   0x8   :  { %43 = dma.hbm_to_vmem [thread:$0]  %s36_s11, 512, %s38_s13, [#allocation6], %s5635_s17, %s5635_s17, %s5636_s18  }
   0x9   :  { %s61_s20 = sshll.u32 %s5637_s19, 4  ;;  %s5638_s21 = smov 256   ;;  %s62_s20 = int_to_ptr.vmem [resolvable:$true] %s61_s20 }
   0xa   :  { %s5639_s22 = smov 16   ;;  %s83_s24 = sshll.u32 %s5854_s5, 4  ;;  %s84_s24 = int_to_ptr.hbm [resolvable:$true] %s83_s24 }
   0xb   :  { %67 = dma.hbm_to_vmem [thread:$0]  %s60_s16, 8192, %s62_s20, [#allocation9], %s5638_s21, %s5638_s21, %s5639_s22  }
   0xc   :  { %s5640_s25 = smov [#allocation11]   ;;  %s25_s28 = sshll.u32 %s5849_s0, 4  ;;  %s26_s28 = int_to_ptr.hbm [resolvable:$true] %s25_s28 }
   0xd   :  { %s85_s26 = sshll.u32 %s5640_s25, 4  ;;  %s5641_s29 = smov 512   ;;  %s86_s26 = int_to_ptr.vmem [resolvable:$true] %s85_s26 }
   0xe   :  { %s5642_s30 = smov 32   ;;  %s5643_s10 = smov [#allocation2]  }
   0xf   :  { %91 = dma.hbm_to_vmem [thread:$0]  %s84_s24, 32768, %s86_s26, [#allocation12], %s5641_s29, %s5641_s29, %s5642_s30  }
  0x10   :  { %s27_s11 = sshll.u32 %s5643_s10, 4  ;;  %s49_s14 = sshll.u32 %s5851_s2, 4  ;;  %s28_s11 = int_to_ptr.vmem [resolvable:$true] %s27_s11  ;;  %s50_s14 = int_to_ptr.hbm [resolvable:$true] %s49_s14 }
  0x11   :  { %30 = dma.hbm_to_vmem [thread:$0]  %s26_s28, 128, %s28_s11, [#allocation3]  }
  0x12   :  { %s73_s16 = sshll.u32 %s5853_s4, 4  ;;  %s5644_s17 = smov [#allocation7]   ;;  %s74_s16 = int_to_ptr.hbm [resolvable:$true] %s73_s16 }
  0x13   :  { %s51_s18 = sshll.u32 %s5644_s17, 4  ;;  %s5645_s0 = smov [#allocation10]   ;;  %s52_s18 = int_to_ptr.vmem [resolvable:$true] %s51_s18 }
  0x14   :  { %54 = dma.hbm_to_vmem [thread:$0]  %s50_s14, 32, %s52_s18, [#allocation6]  }
  0x15   :  { %s75_s19 = sshll.u32 %s5645_s0, 4  ;;  %s97_s22 = sshll.u32 %s5855_s6, 4  ;;  %s76_s19 = int_to_ptr.vmem [resolvable:$true] %s75_s19  ;;  %s98_s22 = int_to_ptr.hbm [resolvable:$true] %s97_s22 }
  0x16   :  { %78 = dma.hbm_to_vmem [thread:$0]  %s74_s16, 64, %s76_s19, [#allocation9]  }
  0x17   :  { %s107_s23 = sshll.u32 %s5856_s7, 4  ;;  %s5646_s24 = smov [#allocation13]   ;;  %s108_s23 = int_to_ptr.hbm [resolvable:$true] %s107_s23 }
  0x18   :  { %s99_s4 = sshll.u32 %s5646_s24, 4  ;;  %s5647_s25 = smov [#allocation14]   ;;  %s100_s4 = int_to_ptr.vmem [resolvable:$true] %s99_s4 }
  0x19   :  { %102 = dma.hbm_to_vmem [thread:$0]  %s98_s22, 128, %s100_s4, [#allocation12]  }
  0x1a   :  { %s109_s26 = sshll.u32 %s5647_s25, 4  ;;  %s5648_s27 = smov 64   ;;  %s110_s26 = int_to_ptr.vmem [resolvable:$true] %s109_s26 }
  0x1b   :  { %s5649_s3 = smov 4  }
  0x1c   :  { %115 = dma.hbm_to_vmem [thread:$0]  %s108_s23, 8192, %s110_s26, [#allocation15], %s5648_s27, %s5648_s27, %s5649_s3  }
  0x1d   :  { %5622 = dma.done.wait [#allocation3], 128  }
  0x1e   :  { %5623 = vsyncadd [#allocation3], 4294967168 }
  0x1f   :  { %5624 = dma.done.wait [#allocation6], 544  }
  0x20   :  { %5625 = vsyncadd [#allocation6], 4294966752 }
  0x21   :  { %5626 = dma.done.wait [#allocation9], 8256  }
  0x22   :  { %5627 = vsyncadd [#allocation9], 4294959040 }
  0x23   :  { %5628 = dma.done.wait [#allocation12], 32896  }
  0x24   :  { %5629 = vsyncadd [#allocation12], 4294934400 }
  0x25   :  { %5630 = dma.done.wait [#allocation15], 8192  }
  0x26   :  { %5631 = vsyncadd [#allocation15], 4294959104  ;;  %v3454_v0 = vld [vmem:[#allocation5 + $0x10] sm:$0xf]  ;;  %v5001_v1 = vld [vmem:[#allocation5 + $0x14] sm:$0xf0] }
  0x27   :  { %v5000_v2 = vld [vmem:[#allocation5 + $0x14] sm:$0xf]  ;;  %v3455_v3 = vor.u32 %v5001_v1, %v3454_v0  ;;  %v3456_v4 = vld [vmem:[#allocation5 + $0x18] sm:$0xf0]  ;;  %v3446_v5 = vld [vmem:[#allocation5] sm:$0xf] }
  0x28   :  { %v4999_v6 = vld [vmem:[#allocation5 + $0x4] sm:$0xf0]  ;;  %v3459_v7 = vor.u32 %v5000_v2, %v3456_v4  ;;  %v4998_v8 = vld [vmem:[#allocation5 + $0x4] sm:$0xf]  ;;  %v3448_v9 = vld [vmem:[#allocation5 + $0x8] sm:$0xf0] }
  0x29   :  { %v151_v10 = vld [vmem:[#allocation2] sm:$0xff]  ;;  %vm183_vm0 = vcmask 261120   ;;  %193 = vmatpush.bf16.msra.mxu0 %v3455_v3  ;;  %v3447_v11 = vor.u32 %v4999_v6, %v3446_v5  ;;  %v3576_v12 = vld [vmem:[#allocation8 + $0xe0] sm:$0xf]  ;;  %v5032_v13 = vld [vmem:[#allocation8 + $0xec] sm:$0xf0]  ;;  %v3451_v15 = vor.u32 %v4998_v8, %v3448_v9 }
  0x2a   :  { %v3704_v14 = vld [vmem:[#allocation8 + $0x1e0] sm:$0xf]  ;;  %206 = vmatpush.bf16.msra.mxu1 %v3459_v7  ;;  %v3577_v16 = vor.u32 %v5032_v13, %v3576_v12  ;;  %v5064_v17 = vld [vmem:[#allocation8 + $0x1ec] sm:$0xf0]  ;;  %v5030_v18 = vld [vmem:[#allocation8 + $0xe4] sm:$0xf]  ;;  %v152_v25 = vpack.c.bf16 %v151_v10, %v151_v10 }
  0x2b   :  { %v3578_v19 = vld [vmem:[#allocation8 + $0xf0] sm:$0xf0]  ;;  %v3705_v20 = vor.u32 %v5064_v17, %v3704_v14  ;;  %v5062_v22 = vld [vmem:[#allocation8 + $0x1e4] sm:$0xf]  ;;  %v3560_v24 = vld [vmem:[#allocation8 + $0xc0] sm:$0xf] }
  0x2c   :  { %v3581_v21 = vor.u32 %v5030_v18, %v3578_v19  ;;  %v3706_v23 = vld [vmem:[#allocation8 + $0x1f0] sm:$0xf0]  ;;  %624 = vmatpush.bf16.msra.mxu2 %v3577_v16  ;;  %v5028_v27 = vld [vmem:[#allocation8 + $0xcc] sm:$0xf0]  ;;  %v3688_v28 = vld [vmem:[#allocation8 + $0x1c0] sm:$0xf] }
  0x2d   :  { %v3709_v26 = vor.u32 %v5062_v22, %v3706_v23  ;;  %v5060_v29 = vld [vmem:[#allocation8 + $0x1cc] sm:$0xf0]  ;;  %194 = vmatpush.bf16.msra.mxu0 %v3447_v11  ;;  %637 = vmatpush.bf16.msra.mxu3 %v3705_v20  ;;  %v3561_v30 = vor.u32 %v5028_v27, %v3560_v24  ;;  %v5026_v32 = vld [vmem:[#allocation8 + $0xc4] sm:$0xf]  ;;  %v3562_v33 = vld [vmem:[#allocation8 + $0xd0] sm:$0xf0] }
  0x2e   :  { %v3689_v31 = vor.u32 %v5060_v29, %v3688_v28  ;;  %v5058_v34 = vld [vmem:[#allocation8 + $0x1c4] sm:$0xf]  ;;  %207 = vmatpush.bf16.msra.mxu1 %v3451_v15  ;;  %v3565_v35 = vor.u32 %v5026_v32, %v3562_v33  ;;  %v3690_v36 = vld [vmem:[#allocation8 + $0x1d0] sm:$0xf0]  ;;  %v3544_v37 = vld [vmem:[#allocation8 + $0xa0] sm:$0xf] }
  0x2f   :  { %v5024_v38 = vld [vmem:[#allocation8 + $0xac] sm:$0xf0]  ;;  %v3693_v39 = vor.u32 %v5058_v34, %v3690_v36  ;;  %v3672_v40 = vld [vmem:[#allocation8 + $0x1a0] sm:$0xf]  ;;  %v5022_v42 = vld [vmem:[#allocation8 + $0xa4] sm:$0xf] }
  0x30   :  { %v5056_v41 = vld [vmem:[#allocation8 + $0x1ac] sm:$0xf0]  ;;  %3460 = vmatmul.msk.bf16.vlgmr.msra.gmra.mxu0 %vm183_vm0, %v152_v25  ;;  %625 = vmatpush.bf16.msra.mxu2 %v3561_v30  ;;  %v3545_v43 = vor.u32 %v5024_v38, %v3544_v37  ;;  %v3546_v44 = vld [vmem:[#allocation8 + $0xb0] sm:$0xf0]  ;;  %v5054_v45 = vld [vmem:[#allocation8 + $0x1a4] sm:$0xf] }
  0x31   :  { %650 = vmatpush.bf16.msrb.mxu0 %v3581_v21  ;;  %v3674_v46 = vld [vmem:[#allocation8 + $0x1b0] sm:$0xf0]  ;;  %3461 = vmatmul.msk.bf16.vlgmr.msra.gmra.mxu1 %vm183_vm0, %v152_v25  ;;  %v3673_v47 = vor.u32 %v5056_v41, %v3672_v40  ;;  %v3528_v48 = vld [vmem:[#allocation8 + $0x80] sm:$0xf]  ;;  %v5020_v49 = vld [vmem:[#allocation8 + $0x8c] sm:$0xf0]  ;;  %v3549_v50 = vor.u32 %v5022_v42, %v3546_v44 }
  0x32   :  { %663 = vmatpush.bf16.msrb.mxu1 %v3709_v26  ;;  %638 = vmatpush.bf16.msra.mxu3 %v3689_v31  ;;  %v3656_v51 = vld [vmem:[#allocation8 + $0x180] sm:$0xf]  ;;  %v5052_v52 = vld [vmem:[#allocation8 + $0x18c] sm:$0xf0]  ;;  %v3677_v53 = vor.u32 %v5054_v45, %v3674_v46  ;;  %v5018_v54 = vld [vmem:[#allocation8 + $0x84] sm:$0xf]  ;;  %v3529_v56 = vor.u32 %v5020_v49, %v3528_v48 }
  0x33   :  { %v3530_v55 = vld [vmem:[#allocation8 + $0x90] sm:$0xf0]  ;;  %v5050_v57 = vld [vmem:[#allocation8 + $0x184] sm:$0xf]  ;;  %v3657_v59 = vor.u32 %v5052_v52, %v3656_v51  ;;  %v3512_v60 = vld [vmem:[#allocation8 + $0x60] sm:$0xf] }
  0x34   :  { %626 = vmatpush.bf16.msra.mxu2 %v3545_v43  ;;  %v3658_v58 = vld [vmem:[#allocation8 + $0x190] sm:$0xf0]  ;;  %v5016_v61 = vld [vmem:[#allocation8 + $0x6c] sm:$0xf0]  ;;  %v3533_v62 = vor.u32 %v5018_v54, %v3530_v55  ;;  %v3640_v63 = vld [vmem:[#allocation8 + $0x160] sm:$0xf] }
  0x35   :  { %651 = vmatpush.bf16.msrb.mxu0 %v3565_v35  ;;  %v5048_v0 = vld [vmem:[#allocation8 + $0x16c] sm:$0xf0]  ;;  %v3661_v1 = vor.u32 %v5050_v57, %v3658_v58  ;;  %v5014_v2 = vld [vmem:[#allocation8 + $0x64] sm:$0xf]  ;;  %v3514_v3 = vld [vmem:[#allocation8 + $0x70] sm:$0xf0]  ;;  %v3513_v4 = vor.u32 %v5016_v61, %v3512_v60 }
  0x36   :  { %664 = vmatpush.bf16.msrb.mxu1 %v3693_v39  ;;  %639 = vmatpush.bf16.msra.mxu3 %v3673_v47  ;;  %v5046_v5 = vld [vmem:[#allocation8 + $0x164] sm:$0xf]  ;;  %v3642_v6 = vld [vmem:[#allocation8 + $0x170] sm:$0xf0]  ;;  %v3641_v7 = vor.u32 %v5048_v0, %v3640_v63  ;;  %v3496_v8 = vld [vmem:[#allocation8 + $0x40] sm:$0xf]  ;;  %v3517_v10 = vor.u32 %v5014_v2, %v3514_v3 }
  0x37   :  { %v5012_v9 = vld [vmem:[#allocation8 + $0x4c] sm:$0xf0]  ;;  %v3624_v11 = vld [vmem:[#allocation8 + $0x140] sm:$0xf]  ;;  %v3645_v13 = vor.u32 %v5046_v5, %v3642_v6  ;;  %v5010_v14 = vld [vmem:[#allocation8 + $0x44] sm:$0xf] }
  0x38   :  { %627 = vmatpush.bf16.msra.mxu2 %v3529_v56  ;;  %v5044_v12 = vld [vmem:[#allocation8 + $0x14c] sm:$0xf0]  ;;  %v3498_v15 = vld [vmem:[#allocation8 + $0x50] sm:$0xf0]  ;;  %v3497_v16 = vor.u32 %v5012_v9, %v3496_v8  ;;  %v5042_v17 = vld [vmem:[#allocation8 + $0x144] sm:$0xf] }
  0x39   :  { %652 = vmatpush.bf16.msrb.mxu0 %v3549_v50  ;;  %v3626_v18 = vld [vmem:[#allocation8 + $0x150] sm:$0xf0]  ;;  %v3625_v19 = vor.u32 %v5044_v12, %v3624_v11  ;;  %v3480_v20 = vld [vmem:[#allocation8 + $0x20] sm:$0xf]  ;;  %v5008_v21 = vld [vmem:[#allocation8 + $0x2c] sm:$0xf0]  ;;  %v3501_v22 = vor.u32 %v5010_v14, %v3498_v15 }
  0x3a   :  { %665 = vmatpush.bf16.msrb.mxu1 %v3677_v53  ;;  %640 = vmatpush.bf16.msra.mxu3 %v3657_v59  ;;  %v3608_v23 = vld [vmem:[#allocation8 + $0x120] sm:$0xf]  ;;  %v5040_v24 = vld [vmem:[#allocation8 + $0x12c] sm:$0xf0]  ;;  %v3629_v25 = vor.u32 %v5042_v17, %v3626_v18  ;;  %v5006_v26 = vld [vmem:[#allocation8 + $0x24] sm:$0xf]  ;;  %v3481_v28 = vor.u32 %v5008_v21, %v3480_v20 }
  0x3b   :  { %v3482_v27 = vld [vmem:[#allocation8 + $0x30] sm:$0xf0]  ;;  %v5038_v29 = vld [vmem:[#allocation8 + $0x124] sm:$0xf]  ;;  %v3609_v31 = vor.u32 %v5040_v24, %v3608_v23  ;;  %v3464_v34 = vld [vmem:[#allocation8] sm:$0xf] }
  0x3c   :  { %628 = vmatpush.bf16.msra.mxu2 %v3513_v4  ;;  %v3610_v30 = vld [vmem:[#allocation8 + $0x130] sm:$0xf0]  ;;  %v3485_v32 = vor.u32 %v5006_v26, %v3482_v27  ;;  %v5004_v35 = vld [vmem:[#allocation8 + $0xc] sm:$0xf0]  ;;  %v3592_v36 = vld [vmem:[#allocation8 + $0x100] sm:$0xf] }
  0x3d   :  { %653 = vmatpush.bf16.msrb.mxu0 %v3533_v62  ;;  %v3613_v33 = vor.u32 %v5038_v29, %v3610_v30  ;;  %v3465_v37 = vor.u32 %v5004_v35, %v3464_v34  ;;  %v5036_v38 = vld [vmem:[#allocation8 + $0x10c] sm:$0xf0]  ;;  %v5002_v39 = vld [vmem:[#allocation8 + $0x4] sm:$0xf]  ;;  %v3466_v40 = vld [vmem:[#allocation8 + $0x10] sm:$0xf0] }
  0x3e   :  { %666 = vmatpush.bf16.msrb.mxu1 %v3661_v1  ;;  %641 = vmatpush.bf16.msra.mxu3 %v3641_v7  ;;  %v3593_v41 = vor.u32 %v5036_v38, %v3592_v36  ;;  %v3469_v42 = vor.u32 %v5002_v39, %v3466_v40  ;;  %v5034_v43 = vld [vmem:[#allocation8 + $0x104] sm:$0xf]  ;;  %v3594_v44 = vld [vmem:[#allocation8 + $0x110] sm:$0xf0]  ;;  %v3584_v46 = vld [vmem:[#allocation8 + $0xe8] sm:$0xf] }
  0x3f   :  { %v3597_v45 = vor.u32 %v5034_v43, %v3594_v44  ;;  %v5033_v47 = vld [vmem:[#allocation8 + $0xf4] sm:$0xf0]  ;;  %v3712_v48 = vld [vmem:[#allocation8 + $0x1e8] sm:$0xf]  ;;  %v5031_v51 = vld [vmem:[#allocation8 + $0xec] sm:$0xf] }
  0x40   :  { %629 = vmatpush.bf16.msra.mxu2 %v3497_v16  ;;  %v3585_v49 = vor.u32 %v5033_v47, %v3584_v46  ;;  %v5065_v50 = vld [vmem:[#allocation8 + $0x1f4] sm:$0xf0]  ;;  %v3586_v52 = vld [vmem:[#allocation8 + $0xf8] sm:$0xf0]  ;;  %v5063_v55 = vld [vmem:[#allocation8 + $0x1ec] sm:$0xf] }
  0x41   :  { %654 = vmatpush.bf16.msrb.mxu0 %v3517_v10  ;;  %v3713_v53 = vor.u32 %v5065_v50, %v3712_v48  ;;  %v3589_v54 = vor.u32 %v5031_v51, %v3586_v52  ;;  %v3714_v56 = vld [vmem:[#allocation8 + $0x1f8] sm:$0xf0]  ;;  %v3568_v57 = vld [vmem:[#allocation8 + $0xc8] sm:$0xf]  ;;  %v5029_v59 = vld [vmem:[#allocation8 + $0xd4] sm:$0xf0] }
  0x42   :  { %667 = vmatpush.bf16.msrb.mxu1 %v3645_v13  ;;  %642 = vmatpush.bf16.msra.mxu3 %v3625_v19  ;;  %v3717_v58 = vor.u32 %v5063_v55, %v3714_v56  ;;  %v3696_v60 = vld [vmem:[#allocation8 + $0x1c8] sm:$0xf]  ;;  %v5061_v61 = vld [vmem:[#allocation8 + $0x1d4] sm:$0xf0]  ;;  %v3569_v62 = vor.u32 %v5029_v59, %v3568_v57  ;;  %v5027_v0 = vld [vmem:[#allocation8 + $0xcc] sm:$0xf] }
  0x43   :  { %v3697_v63 = vor.u32 %v5061_v61, %v3696_v60  ;;  %v3570_v1 = vld [vmem:[#allocation8 + $0xd8] sm:$0xf0]  ;;  %v5059_v2 = vld [vmem:[#allocation8 + $0x1cc] sm:$0xf]  ;;  %v3552_v6 = vld [vmem:[#allocation8 + $0xa8] sm:$0xf] }
  0x44   :  { %630 = vmatpush.bf16.msra.mxu2 %v3481_v28  ;;  %v3573_v3 = vor.u32 %v5027_v0, %v3570_v1  ;;  %v3698_v4 = vld [vmem:[#allocation8 + $0x1d8] sm:$0xf0]  ;;  %v5025_v7 = vld [vmem:[#allocation8 + $0xb4] sm:$0xf0]  ;;  %v3680_v8 = vld [vmem:[#allocation8 + $0x1a8] sm:$0xf] }
  0x45   :  { %655 = vmatpush.bf16.msrb.mxu0 %v3501_v22  ;;  %v3701_v5 = vor.u32 %v5059_v2, %v3698_v4  ;;  %v3553_v9 = vor.u32 %v5025_v7, %v3552_v6  ;;  %v5057_v10 = vld [vmem:[#allocation8 + $0x1b4] sm:$0xf0]  ;;  %v5023_v11 = vld [vmem:[#allocation8 + $0xac] sm:$0xf]  ;;  %v3554_v12 = vld [vmem:[#allocation8 + $0xb8] sm:$0xf0] }
  0x46   :  { %668 = vmatpush.bf16.msrb.mxu1 %v3629_v25  ;;  %643 = vmatpush.bf16.msra.mxu3 %v3609_v31  ;;  %v3681_v13 = vor.u32 %v5057_v10, %v3680_v8  ;;  %v3557_v14 = vor.u32 %v5023_v11, %v3554_v12  ;;  %v5055_v15 = vld [vmem:[#allocation8 + $0x1ac] sm:$0xf]  ;;  %v3682_v16 = vld [vmem:[#allocation8 + $0x1b8] sm:$0xf0]  ;;  %v3536_v18 = vld [vmem:[#allocation8 + $0x88] sm:$0xf] }
  0x47   :  { %v3685_v17 = vor.u32 %v5055_v15, %v3682_v16  ;;  %v5021_v19 = vld [vmem:[#allocation8 + $0x94] sm:$0xf0]  ;;  %v3664_v20 = vld [vmem:[#allocation8 + $0x188] sm:$0xf]  ;;  %v5019_v23 = vld [vmem:[#allocation8 + $0x8c] sm:$0xf] }
  0x48   :  { %631 = vmatpush.bf16.msra.mxu2 %v3465_v37  ;;  %v3537_v21 = vor.u32 %v5021_v19, %v3536_v18  ;;  %v5053_v22 = vld [vmem:[#allocation8 + $0x194] sm:$0xf0]  ;;  %v3538_v24 = vld [vmem:[#allocation8 + $0x98] sm:$0xf0]  ;;  %v5051_v27 = vld [vmem:[#allocation8 + $0x18c] sm:$0xf] }
  0x49   :  { %656 = vmatpush.bf16.msrb.mxu0 %v3485_v32  ;;  %v3665_v25 = vor.u32 %v5053_v22, %v3664_v20  ;;  %v3541_v26 = vor.u32 %v5019_v23, %v3538_v24  ;;  %v3666_v28 = vld [vmem:[#allocation8 + $0x198] sm:$0xf0]  ;;  %v3520_v30 = vld [vmem:[#allocation8 + $0x68] sm:$0xf]  ;;  %v5017_v31 = vld [vmem:[#allocation8 + $0x74] sm:$0xf0] }
  0x4a   :  { %669 = vmatpush.bf16.msrb.mxu1 %v3613_v33  ;;  %644 = vmatpush.bf16.msra.mxu3 %v3593_v41  ;;  %v3669_v29 = vor.u32 %v5051_v27, %v3666_v28  ;;  %v3648_v32 = vld [vmem:[#allocation8 + $0x168] sm:$0xf]  ;;  %v3521_v33 = vor.u32 %v5017_v31, %v3520_v30  ;;  %v5049_v34 = vld [vmem:[#allocation8 + $0x174] sm:$0xf0]  ;;  %v5015_v35 = vld [vmem:[#allocation8 + $0x6c] sm:$0xf] }
  0x4b   :  { %v3522_v36 = vld [vmem:[#allocation8 + $0x78] sm:$0xf0]  ;;  %v3649_v37 = vor.u32 %v5049_v34, %v3648_v32  ;;  %v5047_v39 = vld [vmem:[#allocation8 + $0x16c] sm:$0xf]  ;;  %v3504_v41 = vld [vmem:[#allocation8 + $0x48] sm:$0xf] }
  0x4c   :  { %676 = vmatpush.bf16.msrb.mxu2 %v3585_v49  ;;  %v3525_v38 = vor.u32 %v5015_v35, %v3522_v36  ;;  %v3650_v40 = vld [vmem:[#allocation8 + $0x178] sm:$0xf0]  ;;  %v5013_v43 = vld [vmem:[#allocation8 + $0x54] sm:$0xf0]  ;;  %v3632_v44 = vld [vmem:[#allocation8 + $0x148] sm:$0xf] }
  0x4d   :  { %657 = vmatpush.bf16.msrb.mxu0 %v3469_v42  ;;  %v3653_v42 = vor.u32 %v5047_v39, %v3650_v40  ;;  %v3505_v46 = vor.u32 %v5013_v43, %v3504_v41  ;;  %v5011_v47 = vld [vmem:[#allocation8 + $0x4c] sm:$0xf]  ;;  %v3506_v48 = vld [vmem:[#allocation8 + $0x58] sm:$0xf0]  ;;  %v3616_v56 = vld [vmem:[#allocation8 + $0x128] sm:$0xf] }
  0x4e   :  { %670 = vmatpush.bf16.msrb.mxu1 %v3597_v45  ;;  %689 = vmatpush.bf16.msrb.mxu3 %v3713_v53  ;;  %v5045_v45 = vld [vmem:[#allocation8 + $0x154] sm:$0xf0]  ;;  %v5043_v49 = vld [vmem:[#allocation8 + $0x14c] sm:$0xf]  ;;  %v3509_v51 = vor.u32 %v5011_v47, %v3506_v48  ;;  %v3634_v52 = vld [vmem:[#allocation8 + $0x158] sm:$0xf0] }
  0x4f   :  { %v3633_v50 = vor.u32 %v5045_v45, %v3632_v44  ;;  %v3488_v53 = vld [vmem:[#allocation8 + $0x28] sm:$0xf]  ;;  %v3637_v55 = vor.u32 %v5043_v49, %v3634_v52  ;;  %v5041_v57 = vld [vmem:[#allocation8 + $0x134] sm:$0xf0]  ;;  %v3490_v59 = vld [vmem:[#allocation8 + $0x38] sm:$0xf0] }
  0x50   :  { %677 = vmatpush.bf16.msrb.mxu2 %v3569_v62  ;;  %v5039_v60 = vld [vmem:[#allocation8 + $0x12c] sm:$0xf]  ;;  %v3618_v61 = vld [vmem:[#allocation8 + $0x138] sm:$0xf0]  ;;  %v3617_v0 = vor.u32 %v5041_v57, %v3616_v56  ;;  %v3472_v2 = vld [vmem:[#allocation8 + $0x8] sm:$0xf] }
  0x51   :  { %702 = vmatpush.bf16.msra.mxu0 %v3589_v54  ;;  %v5009_v54 = vld [vmem:[#allocation8 + $0x34] sm:$0xf0]  ;;  %v157_v62 = vld [vmem:[#allocation7] sm:$0x3]  ;;  %v3600_v4 = vld [vmem:[#allocation8 + $0x108] sm:$0xf] }
  0x52   :  { %715 = vmatpush.bf16.msra.mxu1 %v3717_v58  ;;  %690 = vmatpush.bf16.msrb.mxu3 %v3697_v63  ;;  %v5007_v58 = vld [vmem:[#allocation8 + $0x2c] sm:$0xf]  ;;  %v3489_v63 = vor.u32 %v5009_v54, %v3488_v53  ;;  %v5037_v6 = vld [vmem:[#allocation8 + $0x114] sm:$0xf0]  ;;  %v3474_v8 = vld [vmem:[#allocation8 + $0x18] sm:$0xf0] }
  0x53   :  { %v3493_v1 = vor.u32 %v5007_v58, %v3490_v59  ;;  %v5003_v7 = vld [vmem:[#allocation8 + $0xc] sm:$0xf]  ;;  %v3602_v10 = vld [vmem:[#allocation8 + $0x118] sm:$0xf0]  ;;  %v159_v12 = vperm.slane %v157_v62, 0  ;;  %v160_v15 = vperm.slane %v157_v62, 1 }
  0x54   :  { %678 = vmatpush.bf16.msrb.mxu2 %v3553_v9  ;;  %v5035_v9 = vld [vmem:[#allocation8 + $0x10c] sm:$0xf]  ;;  %v5126_v30 = vld [vmem:[#allocation11 + $0x1dc] sm:$0xf0]  ;;  %s3430_s10 = sshll.u32 %s5858_s9, 4  ;;  %s3431_s10 = int_to_ptr.hbm [resolvable:$true] %s3430_s10 }
  0x55   :  { %703 = vmatpush.bf16.msra.mxu0 %v3573_v3  ;;  %v5005_v3 = vld [vmem:[#allocation8 + $0x14] sm:$0xf0]  ;;  %v3605_v16 = vor.u32 %v5035_v9, %v3602_v10  ;;  %v4200_v32 = vld [vmem:[#allocation11 + $0x3c0] sm:$0xf] }
  0x56   :  { %716 = vmatpush.bf16.msra.mxu1 %v3701_v5  ;;  %691 = vmatpush.bf16.msrb.mxu3 %v3681_v13  ;;  %v3621_v5 = vor.u32 %v5039_v60, %v3618_v61  ;;  %v3473_v11 = vor.u32 %v5005_v3, %v3472_v2  ;;  %v3601_v13 = vor.u32 %v5037_v6, %v3600_v4  ;;  %v4456_v34 = vld [vmem:[#allocation11 + $0x5c0] sm:$0xf] }
  0x57   :  { %v5318_v39 = vld [vmem:[#allocation11 + $0x7dc] sm:$0xf0] }
  0x58   :  { %679 = vmatpush.bf16.msrb.mxu2 %v3537_v21  ;;  %v3912_v44 = vld [vmem:[#allocation11 + $0x180] sm:$0xf] }
  0x59   :  { %704 = vmatpush.bf16.msra.mxu0 %v3557_v14  ;;  %v3477_v14 = vor.u32 %v5003_v7, %v3474_v8  ;;  %v5118_v45 = vld [vmem:[#allocation11 + $0x19c] sm:$0xf0] }
  0x5a   :  { %717 = vmatpush.bf16.msra.mxu1 %v3685_v17  ;;  %692 = vmatpush.bf16.msrb.mxu3 %v3665_v25  ;;  %v5182_v47 = vld [vmem:[#allocation11 + $0x39c] sm:$0xf0]  ;;  %v3913_v54 = vor.u32 %v5118_v45, %v3912_v44 }
  0x5b   :  { %v4680_v52 = vld [vmem:[#allocation11 + $0x780] sm:$0xf] }
  0x5c   :  { %680 = vmatpush.bf16.msrb.mxu2 %v3521_v33  ;;  %v5190_v33 = vld [vmem:[#allocation11 + $0x3dc] sm:$0xf0] }
  0x5d   :  { %705 = vmatpush.bf16.msra.mxu0 %v3541_v26  ;;  %v4201_v43 = vor.u32 %v5190_v33, %v4200_v32  ;;  %v5310_v53 = vld [vmem:[#allocation11 + $0x79c] sm:$0xf0] }
  0x5e   :  { %718 = vmatpush.bf16.msra.mxu1 %v3669_v29  ;;  %693 = vmatpush.bf16.msrb.mxu3 %v3649_v37  ;;  %v3944_v29 = vld [vmem:[#allocation11 + $0x1c0] sm:$0xf]  ;;  %v4681_v61 = vor.u32 %v5310_v53, %v4680_v52 }
  0x5f   :  { %v5254_v37 = vld [vmem:[#allocation11 + $0x5dc] sm:$0xf0] }
  0x60   :  { %681 = vmatpush.bf16.msrb.mxu2 %v3505_v46  ;;  %v4168_v46 = vld [vmem:[#allocation11 + $0x380] sm:$0xf]  ;;  %v4457_v48 = vor.u32 %v5254_v37, %v4456_v34 }
  0x61   :  { %706 = vmatpush.bf16.msra.mxu0 %v3525_v38  ;;  %v4712_v38 = vld [vmem:[#allocation11 + $0x7c0] sm:$0xf] }
  0x62   :  { %719 = vmatpush.bf16.msra.mxu1 %v3653_v42  ;;  %694 = vmatpush.bf16.msrb.mxu3 %v3633_v50  ;;  %v3945_v42 = vor.u32 %v5126_v30, %v3944_v29  ;;  %v4713_v49 = vor.u32 %v5318_v39, %v4712_v38  ;;  %v4424_v50 = vld [vmem:[#allocation11 + $0x580] sm:$0xf] }
  0x63   :  { %v3880_v56 = vld [vmem:[#allocation11 + $0x140] sm:$0xf] }
  0x64   :  { %682 = vmatpush.bf16.msrb.mxu2 %v3489_v63  ;;  %v5110_v57 = vld [vmem:[#allocation11 + $0x15c] sm:$0xf0] }
  0x65   :  { %707 = vmatpush.bf16.msra.mxu0 %v3509_v51  ;;  %v5246_v51 = vld [vmem:[#allocation11 + $0x59c] sm:$0xf0]  ;;  %v3881_v2 = vor.u32 %v5110_v57, %v3880_v56  ;;  %v5178_v56 = vld [vmem:[#allocation11 + $0x384] sm:$0xf] }
  0x66   :  { %720 = vmatpush.bf16.msra.mxu1 %v3637_v55  ;;  %695 = vmatpush.bf16.msrb.mxu3 %v3617_v0  ;;  %v4169_v55 = vor.u32 %v5182_v47, %v4168_v46  ;;  %v4136_v58 = vld [vmem:[#allocation11 + $0x340] sm:$0xf]  ;;  %v4425_v60 = vor.u32 %v5246_v51, %v4424_v50  ;;  %v5122_v47 = vld [vmem:[#allocation11 + $0x1c4] sm:$0xf] }
  0x67   :  { %v5174_v59 = vld [vmem:[#allocation11 + $0x35c] sm:$0xf0]  ;;  %v4170_v57 = vld [vmem:[#allocation11 + $0x3a0] sm:$0xf0] }
  0x68   :  { %683 = vmatpush.bf16.msrb.mxu2 %v3473_v11  ;;  %v4392_v62 = vld [vmem:[#allocation11 + $0x540] sm:$0xf]  ;;  %v4137_v3 = vor.u32 %v5174_v59, %v4136_v58  ;;  %v4173_v59 = vor.u32 %v5178_v56, %v4170_v57  ;;  %v4394_v56 = vld [vmem:[#allocation11 + $0x560] sm:$0xf0] }
  0x69   :  { %708 = vmatpush.bf16.msra.mxu0 %v3493_v1  ;;  %v5238_v63 = vld [vmem:[#allocation11 + $0x55c] sm:$0xf0] }
  0x6a   :  { %721 = vmatpush.bf16.msra.mxu1 %v3621_v5  ;;  %696 = vmatpush.bf16.msrb.mxu3 %v3601_v13  ;;  %v4648_v0 = vld [vmem:[#allocation11 + $0x740] sm:$0xf]  ;;  %v4393_v8 = vor.u32 %v5238_v63, %v4392_v62 }
  0x6b   :  { %v5302_v1 = vld [vmem:[#allocation11 + $0x75c] sm:$0xf0] }
  0x6c   :  { %v3848_v4 = vld [vmem:[#allocation11 + $0x100] sm:$0xf]  ;;  %v4649_v9 = vor.u32 %v5302_v1, %v4648_v0  ;;  %v5106_v1 = vld [vmem:[#allocation11 + $0x144] sm:$0xf] }
  0x6d   :  { %709 = vmatpush.bf16.msra.mxu0 %v3477_v14  ;;  %v5102_v5 = vld [vmem:[#allocation11 + $0x11c] sm:$0xf0] }
  0x6e   :  { %722 = vmatpush.bf16.msra.mxu1 %v3605_v16  ;;  %v4104_v6 = vld [vmem:[#allocation11 + $0x300] sm:$0xf]  ;;  %v3849_v14 = vor.u32 %v5102_v5, %v3848_v4  ;;  %v5170_v5 = vld [vmem:[#allocation11 + $0x344] sm:$0xf] }
  0x6f   :  { %v5166_v7 = vld [vmem:[#allocation11 + $0x31c] sm:$0xf0] }
  0x70   :  { %v4360_v10 = vld [vmem:[#allocation11 + $0x500] sm:$0xf] }
  0x71   :  { %v5230_v11 = vld [vmem:[#allocation11 + $0x51c] sm:$0xf0] }
  0x72   :  { %v5294_v13 = vld [vmem:[#allocation11 + $0x71c] sm:$0xf0] }
  0x73   :  { %v3816_v16 = vld [vmem:[#allocation11 + $0xc0] sm:$0xf] }
  0x74   :  { %v5086_v29 = vld [vmem:[#allocation11 + $0x9c] sm:$0xf0] }
  0x75   :  { %v4040_v30 = vld [vmem:[#allocation11 + $0x280] sm:$0xf] }
  0x76   :  { %v5078_v37 = vld [vmem:[#allocation11 + $0x5c] sm:$0xf0] }
  0x77   :  { %v4008_v38 = vld [vmem:[#allocation11 + $0x240] sm:$0xf] }
  0x78   :  { %v5142_v39 = vld [vmem:[#allocation11 + $0x25c] sm:$0xf0] }
  0x79   :  { %v3720_v44 = vld [vmem:[#allocation11] sm:$0xf] }
  0x7a   :  { %v5070_v45 = vld [vmem:[#allocation11 + $0x1c] sm:$0xf0] }
  0x7b   :  { %v3976_v46 = vld [vmem:[#allocation11 + $0x200] sm:$0xf]  ;;  %v3721_v50 = vor.u32 %v5070_v45, %v3720_v44  ;;  %v4042_v44 = vld [vmem:[#allocation11 + $0x2a0] sm:$0xf0] }
  0x7c   :  { %v4552_v62 = vld [vmem:[#allocation11 + $0x680] sm:$0xf]  ;;  %v5242_v45 = vld [vmem:[#allocation11 + $0x584] sm:$0xf] }
  0x7d   :  { %v5278_v0 = vld [vmem:[#allocation11 + $0x69c] sm:$0xf0] }
  0xad   :  { %v196_v17 = vpop.f32.mrf.mxu0 }
  0xae   :  { %v197_v18 = vadd.f32 %v196_v17, %v159_v12  ;;  %v209_v19 = vpop.f32.mrf.mxu1  ;;  %v4616_v12 = vld [vmem:[#allocation11 + $0x700] sm:$0xf] }
  0xaf   :  { %v210_v20 = vadd.f32 %v209_v19, %v160_v15  ;;  %v4105_v15 = vor.u32 %v5166_v7, %v4104_v6  ;;  %v5094_v17 = vld [vmem:[#allocation11 + $0xdc] sm:$0xf0]  ;;  %v4138_v6 = vld [vmem:[#allocation11 + $0x360] sm:$0xf0] }
  0xb0   :  { %v5158_v19 = vld [vmem:[#allocation11 + $0x2dc] sm:$0xf0]  ;;  %v4141_v7 = vor.u32 %v5170_v5, %v4138_v6  ;;  %v4362_v5 = vld [vmem:[#allocation11 + $0x520] sm:$0xf0] }
  0xb1   :  { %v213_v21 = vpack.c.bf16 %v210_v20, %v197_v18  ;;  %v4072_v18 = vld [vmem:[#allocation11 + $0x2c0] sm:$0xf]  ;;  %v4361_v20 = vor.u32 %v5230_v11, %v4360_v10  ;;  %v5290_v6 = vld [vmem:[#allocation11 + $0x704] sm:$0xf] }
  0xb2   :  { %v4520_v11 = vld [vmem:[#allocation11 + $0x640] sm:$0xf] }
  0xb3   :  { %v214_v22 = vunpack.c.l.bf16 %v213_v21  ;;  %v215_v23 = vunpack.c.h.bf16 %v213_v21 }
  0xb5   :  { %vm216_vm1 = vcmp.gt.f32.partialorder %v214_v22, 0.0  ;;  %vm217_vm2 = vcmp.gt.f32.partialorder %v215_v23, 0.0  ;;  %v218_v24 = vmul.f32 0.20019531, %v214_v22  ;;  %v219_v25 = vmul.f32 0.20019531, %v215_v23  ;;  %v198_v26 = vpop.f32.mrf.mxu0  ;;  %v4328_v22 = vld [vmem:[#allocation11 + $0x4c0] sm:$0xf] }
  0xb6   :  { %v211_v27 = vpop.f32.mrf.mxu1  ;;  %vm221_vm3 = vmpackc.low %vm217_vm2, %vm216_vm1  ;;  %v5222_v23 = vld [vmem:[#allocation11 + $0x4dc] sm:$0xf0]  ;;  %v3817_v26 = vor.u32 %v5094_v17, %v3816_v16  ;;  %v5162_v16 = vld [vmem:[#allocation11 + $0x304] sm:$0xf] }
  0xb7   :  { %v220_v28 = vpack.c.bf16 %v219_v25, %v218_v24  ;;  %v4584_v24 = vld [vmem:[#allocation11 + $0x6c0] sm:$0xf]  ;;  %v4073_v27 = vor.u32 %v5158_v19, %v4072_v18  ;;  %v4329_v32 = vor.u32 %v5222_v23, %v4328_v22  ;;  %v4106_v17 = vld [vmem:[#allocation11 + $0x320] sm:$0xf0] }
  0xb8   :  { %v5286_v25 = vld [vmem:[#allocation11 + $0x6dc] sm:$0xf0]  ;;  %v4109_v19 = vor.u32 %v5162_v16, %v4106_v17  ;;  %v5739_v16 = vld [vmem:[#allocation10] sm:$0xf]  ;;  %v5210_v17 = vld [vmem:[#allocation11 + $0x484] sm:$0xf] }
  0xb9   :  { %v222_v31 = vsel %vm221_vm3, %v213_v21, %v220_v28  ;;  %v4617_v21 = vor.u32 %v5294_v13, %v4616_v12  ;;  %v3784_v28 = vld [vmem:[#allocation11 + $0x80] sm:$0xf]  ;;  %v4585_v33 = vor.u32 %v5286_v25, %v4584_v24  ;;  %v5098_v13 = vld [vmem:[#allocation11 + $0x104] sm:$0xf] }
  0xba   :  { %v298_v35 = vunpack.c.l.b16 %v222_v31  ;;  %v299_v36 = vunpack.c.h.b16 %v222_v31  ;;  %v5150_v31 = vld [vmem:[#allocation11 + $0x29c] sm:$0xf0]  ;;  %v3785_v34 = vor.u32 %v5086_v29, %v3784_v28  ;;  %v5090_v25 = vld [vmem:[#allocation11 + $0xc4] sm:$0xf] }
  0xbb   :  { %v5270_v12 = vld [vmem:[#allocation11 + $0x65c] sm:$0xf0]  ;;  %v5154_v29 = vld [vmem:[#allocation11 + $0x2c4] sm:$0xf] }
  0xbc   :  { %v5727_v40 = vpack.c.b16 %v298_v35, %v298_v35  ;;  %v5729_v41 = vpack.c.b16 %v299_v36, %v299_v36  ;;  %v4041_v35 = vor.u32 %v5150_v31, %v4040_v30  ;;  %v3752_v36 = vld [vmem:[#allocation11 + $0x40] sm:$0xf]  ;;  %v4074_v30 = vld [vmem:[#allocation11 + $0x2e0] sm:$0xf0] }
  0xbd   :  { %v4488_v22 = vld [vmem:[#allocation11 + $0x600] sm:$0xf]  ;;  %v5250_v31 = vld [vmem:[#allocation11 + $0x5c4] sm:$0xf] }
  0xbe   :  { %632 = vmatmul.bf16.vlgmr.msra.gmra.mxu2 %v5727_v40  ;;  %645 = vmatmul.bf16.vlgmr.msra.gmra.mxu3 %v5729_v41  ;;  %v5262_v24 = vld [vmem:[#allocation11 + $0x61c] sm:$0xf0] }
  0xbf   :  { %658 = vmatmul.bf16.vlgmr.msrb.gmra.mxu0 %v5727_v40  ;;  %671 = vmatmul.bf16.vlgmr.msrb.gmra.mxu1 %v5729_v41 }
  0xc0   :  { %2316 = vmatpush.bf16.msra.mxu2 %v3945_v42  ;;  %2329 = vmatpush.bf16.msra.mxu3 %v4201_v43  ;;  %v3753_v42 = vor.u32 %v5078_v37, %v3752_v36  ;;  %v4009_v43 = vor.u32 %v5142_v39, %v4008_v38  ;;  %v5082_v38 = vld [vmem:[#allocation11 + $0x84] sm:$0xf] }
  0xc1   :  { %2342 = vmatpush.bf16.msrb.mxu0 %v4457_v48  ;;  %2355 = vmatpush.bf16.msrb.mxu1 %v4713_v49  ;;  %v5186_v48 = vld [vmem:[#allocation11 + $0x3c4] sm:$0xf] }
  0xc2   :  { %v4202_v49 = vld [vmem:[#allocation11 + $0x3e0] sm:$0xf0] }
  0xc3   :  { %v4205_v53 = vor.u32 %v5186_v48, %v4202_v49  ;;  %v3786_v39 = vld [vmem:[#allocation11 + $0xa0] sm:$0xf0] }
  0xc4   :  { %2317 = vmatpush.bf16.msra.mxu2 %v3913_v54  ;;  %2330 = vmatpush.bf16.msra.mxu3 %v4169_v55  ;;  %v5114_v54 = vld [vmem:[#allocation11 + $0x184] sm:$0xf] }
  0xc5   :  { %2343 = vmatpush.bf16.msrb.mxu0 %v4425_v60  ;;  %2356 = vmatpush.bf16.msrb.mxu1 %v4681_v61  ;;  %v3914_v55 = vld [vmem:[#allocation11 + $0x1a0] sm:$0xf0]  ;;  %v4296_v60 = vld [vmem:[#allocation11 + $0x480] sm:$0xf] }
  0xc6   :  { %v3917_v58 = vor.u32 %v5114_v54, %v3914_v55  ;;  %v5214_v61 = vld [vmem:[#allocation11 + $0x49c] sm:$0xf0]  ;;  %v4682_v48 = vld [vmem:[#allocation11 + $0x7a0] sm:$0xf0] }
  0xc7   :  { %v4297_v63 = vor.u32 %v5214_v61, %v4296_v60  ;;  %v4010_v54 = vld [vmem:[#allocation11 + $0x260] sm:$0xf0] }
  0xc8   :  { %2318 = vmatpush.bf16.msra.mxu2 %v3881_v2  ;;  %2331 = vmatpush.bf16.msra.mxu3 %v4137_v3  ;;  %v3882_v2 = vld [vmem:[#allocation11 + $0x160] sm:$0xf0]  ;;  %v4553_v3 = vor.u32 %v5278_v0, %v4552_v62 }
  0xc9   :  { %2344 = vmatpush.bf16.msrb.mxu0 %v4393_v8  ;;  %2357 = vmatpush.bf16.msrb.mxu1 %v4649_v9  ;;  %v3885_v4 = vor.u32 %v5106_v1, %v3882_v2  ;;  %v4264_v8 = vld [vmem:[#allocation11 + $0x440] sm:$0xf]  ;;  %v5234_v55 = vld [vmem:[#allocation11 + $0x544] sm:$0xf] }
  0xca   :  { %v5206_v9 = vld [vmem:[#allocation11 + $0x45c] sm:$0xf0]  ;;  %v4650_v60 = vld [vmem:[#allocation11 + $0x760] sm:$0xf0] }
  0xcb   :  { %v4265_v10 = vor.u32 %v5206_v9, %v4264_v8  ;;  %v5066_v62 = vld [vmem:[#allocation11 + $0x4] sm:$0xf] }
  0xcc   :  { %2319 = vmatpush.bf16.msra.mxu2 %v3849_v14  ;;  %2332 = vmatpush.bf16.msra.mxu3 %v4105_v15  ;;  %v4521_v14 = vor.u32 %v5270_v12, %v4520_v11  ;;  %v3850_v15 = vld [vmem:[#allocation11 + $0x120] sm:$0xf0] }
  0xcd   :  { %2345 = vmatpush.bf16.msrb.mxu0 %v4361_v20  ;;  %2358 = vmatpush.bf16.msrb.mxu1 %v4617_v21  ;;  %v3853_v18 = vor.u32 %v5098_v13, %v3850_v15  ;;  %v4232_v20 = vld [vmem:[#allocation11 + $0x400] sm:$0xf]  ;;  %v5130_v0 = vld [vmem:[#allocation11 + $0x204] sm:$0xf] }
  0xce   :  { %684 = vmatmul.bf16.vlgmr.msrb.gmra.mxu2 %v5727_v40  ;;  %697 = vmatmul.bf16.vlgmr.msrb.gmra.mxu3 %v5729_v41  ;;  %v5198_v21 = vld [vmem:[#allocation11 + $0x41c] sm:$0xf0]  ;;  %v3978_v2 = vld [vmem:[#allocation11 + $0x220] sm:$0xf0] }
  0xcf   :  { %710 = vmatmul.bf16.vlgmr.msra.gmra.mxu0 %v5727_v40  ;;  %723 = vmatmul.bf16.vlgmr.msra.gmra.mxu1 %v5729_v41  ;;  %v5134_v40 = vld [vmem:[#allocation11 + $0x21c] sm:$0xf0]  ;;  %v3946_v41 = vld [vmem:[#allocation11 + $0x1e0] sm:$0xf0]  ;;  %v4233_v23 = vor.u32 %v5198_v21, %v4232_v20 }
  0xd0   :  { %2320 = vmatpush.bf16.msra.mxu2 %v3817_v26  ;;  %2333 = vmatpush.bf16.msra.mxu3 %v4073_v27  ;;  %v3977_v51 = vor.u32 %v5134_v40, %v3976_v46  ;;  %v3949_v52 = vor.u32 %v5122_v47, %v3946_v41  ;;  %v3818_v26 = vld [vmem:[#allocation11 + $0xe0] sm:$0xf0]  ;;  %v4489_v27 = vor.u32 %v5262_v24, %v4488_v22 }
  0xd1   :  { %2346 = vmatpush.bf16.msrb.mxu0 %v4329_v32  ;;  %2359 = vmatpush.bf16.msrb.mxu1 %v4585_v33  ;;  %v3821_v28 = vor.u32 %v5090_v25, %v3818_v26  ;;  %v4077_v32 = vor.u32 %v5154_v29, %v4074_v30  ;;  %v4458_v33 = vld [vmem:[#allocation11 + $0x5e0] sm:$0xf0] }
  0xd2   :  { %v4461_v36 = vor.u32 %v5250_v31, %v4458_v33  ;;  %v4426_v46 = vld [vmem:[#allocation11 + $0x5a0] sm:$0xf0]  ;;  %v289_v31 = vperm.slane %v5739_v16, 0 }
  0xd3   :  { %v4429_v47 = vor.u32 %v5242_v45, %v4426_v46  ;;  %v5306_v41 = vld [vmem:[#allocation11 + $0x784] sm:$0xf] }
  0xd4   :  { %2321 = vmatpush.bf16.msra.mxu2 %v3785_v34  ;;  %2334 = vmatpush.bf16.msra.mxu3 %v4041_v35  ;;  %v5314_v34 = vld [vmem:[#allocation11 + $0x7c4] sm:$0xf]  ;;  %v4685_v49 = vor.u32 %v5306_v41, %v4682_v48 }
  0xd5   :  { %2347 = vmatpush.bf16.msrb.mxu0 %v4297_v63  ;;  %2360 = vmatpush.bf16.msrb.mxu1 %v4553_v3  ;;  %v4714_v35 = vld [vmem:[#allocation11 + $0x7e0] sm:$0xf0] }
  0xd6   :  { %v4717_v37 = vor.u32 %v5314_v34, %v4714_v35  ;;  %v3722_v63 = vld [vmem:[#allocation11 + $0x20] sm:$0xf0] }
  0xd7   :  { %v3725_v1 = vor.u32 %v5066_v62, %v3722_v63  ;;  %v5226_v3 = vld [vmem:[#allocation11 + $0x504] sm:$0xf]  ;;  %v291_v63 = vperm.slane %v5739_v16, 2 }
  0xd8   :  { %2322 = vmatpush.bf16.msra.mxu2 %v3753_v42  ;;  %2335 = vmatpush.bf16.msra.mxu3 %v4009_v43  ;;  %v5146_v42 = vld [vmem:[#allocation11 + $0x284] sm:$0xf]  ;;  %v3789_v43 = vor.u32 %v5082_v38, %v3786_v39  ;;  %v4365_v8 = vor.u32 %v5226_v3, %v4362_v5  ;;  %v3920_v5 = vld [vmem:[#allocation11 + $0x188] sm:$0xf] }
  0xd9   :  { %2348 = vmatpush.bf16.msrb.mxu0 %v4265_v10  ;;  %2361 = vmatpush.bf16.msrb.mxu1 %v4521_v14  ;;  %v4045_v40 = vor.u32 %v5146_v42, %v4042_v44  ;;  %v5218_v10 = vld [vmem:[#allocation11 + $0x4c4] sm:$0xf] }
  0xda   :  { %v4330_v11 = vld [vmem:[#allocation11 + $0x4e0] sm:$0xf0] }
  0xdb   :  { %v4333_v12 = vor.u32 %v5218_v10, %v4330_v11  ;;  %v5282_v13 = vld [vmem:[#allocation11 + $0x6c4] sm:$0xf]  ;;  %v4176_v11 = vld [vmem:[#allocation11 + $0x388] sm:$0xf] }
  0xdc   :  { %2323 = vmatpush.bf16.msra.mxu2 %v3721_v50  ;;  %2336 = vmatpush.bf16.msra.mxu3 %v3977_v51  ;;  %v5074_v50 = vld [vmem:[#allocation11 + $0x44] sm:$0xf] }
  0xdd   :  { %2349 = vmatpush.bf16.msrb.mxu0 %v4233_v23  ;;  %2362 = vmatpush.bf16.msrb.mxu1 %v4489_v27  ;;  %v3754_v51 = vld [vmem:[#allocation11 + $0x60] sm:$0xf0]  ;;  %v290_v23 = vperm.slane %v5739_v16, 1 }
  0xde   :  { %v4586_v14 = vld [vmem:[#allocation11 + $0x6e0] sm:$0xf0] }
  0xdf   :  { %v4589_v15 = vor.u32 %v5282_v13, %v4586_v14  ;;  %v4554_v21 = vld [vmem:[#allocation11 + $0x6a0] sm:$0xf0] }
  0xe0   :  { %2368 = vmatpush.bf16.msrb.mxu2 %v3949_v52  ;;  %2381 = vmatpush.bf16.msrb.mxu3 %v4205_v53  ;;  %v5138_v52 = vld [vmem:[#allocation11 + $0x244] sm:$0xf]  ;;  %v3757_v53 = vor.u32 %v5074_v50, %v3754_v51 }
  0xe1   :  { %2394 = vmatpush.bf16.msra.mxu0 %v4461_v36  ;;  %2407 = vmatpush.bf16.msra.mxu1 %v4717_v37  ;;  %v4013_v57 = vor.u32 %v5138_v52, %v4010_v54  ;;  %v5202_v26 = vld [vmem:[#allocation11 + $0x444] sm:$0xf] }
  0xe2   :  { %v4266_v27 = vld [vmem:[#allocation11 + $0x460] sm:$0xf0] }
  0xe3   :  { %v4269_v29 = vor.u32 %v5202_v26, %v4266_v27  ;;  %v4522_v30 = vld [vmem:[#allocation11 + $0x660] sm:$0xf0] }
  0xe4   :  { %2369 = vmatpush.bf16.msrb.mxu2 %v3917_v58  ;;  %2382 = vmatpush.bf16.msrb.mxu3 %v4173_v59  ;;  %v4397_v58 = vor.u32 %v5234_v55, %v4394_v56  ;;  %v5298_v59 = vld [vmem:[#allocation11 + $0x744] sm:$0xf]  ;;  %v292_v55 = vperm.slane %v5739_v16, 3 }
  0xe5   :  { %2395 = vmatpush.bf16.msra.mxu0 %v4429_v47  ;;  %2408 = vmatpush.bf16.msra.mxu1 %v4685_v49  ;;  %v4653_v61 = vor.u32 %v5298_v59, %v4650_v60  ;;  %v5194_v34 = vld [vmem:[#allocation11 + $0x404] sm:$0xf]  ;;  %v5127_v59 = vld [vmem:[#allocation11 + $0x1e4] sm:$0xf0] }
  0xe6   :  { %v4234_v35 = vld [vmem:[#allocation11 + $0x420] sm:$0xf0]  ;;  %v4208_v60 = vld [vmem:[#allocation11 + $0x3c8] sm:$0xf] }
  0xe7   :  { %v5258_v36 = vld [vmem:[#allocation11 + $0x604] sm:$0xf]  ;;  %v4237_v39 = vor.u32 %v5194_v34, %v4234_v35  ;;  %v5167_v34 = vld [vmem:[#allocation11 + $0x324] sm:$0xf0] }
  0xe8   :  { %2370 = vmatpush.bf16.msrb.mxu2 %v3885_v4  ;;  %2383 = vmatpush.bf16.msrb.mxu3 %v4141_v7  ;;  %v3981_v4 = vor.u32 %v5130_v0, %v3978_v2  ;;  %v4618_v7 = vld [vmem:[#allocation11 + $0x720] sm:$0xf0] }
  0xe9   :  { %2396 = vmatpush.bf16.msra.mxu0 %v4397_v58  ;;  %2409 = vmatpush.bf16.msra.mxu1 %v4653_v61  ;;  %v4621_v9 = vor.u32 %v5290_v6, %v4618_v7  ;;  %v4490_v42 = vld [vmem:[#allocation11 + $0x620] sm:$0xf0]  ;;  %v3952_v58 = vld [vmem:[#allocation11 + $0x1c8] sm:$0xf] }
  0xea   :  { %v4493_v44 = vor.u32 %v5258_v36, %v4490_v42  ;;  %v5191_v61 = vld [vmem:[#allocation11 + $0x3e4] sm:$0xf0]  ;;  %v3953_v3 = vor.u32 %v5127_v59, %v3952_v58 }
  0xeb   :  { %v5119_v6 = vld [vmem:[#allocation11 + $0x1a4] sm:$0xf0] }
  0xec   :  { %2371 = vmatpush.bf16.msrb.mxu2 %v3853_v18  ;;  %2384 = vmatpush.bf16.msrb.mxu3 %v4109_v19  ;;  %v4298_v18 = vld [vmem:[#allocation11 + $0x4a0] sm:$0xf0]  ;;  %v3921_v14 = vor.u32 %v5119_v6, %v3920_v5  ;;  %v3824_v42 = vld [vmem:[#allocation11 + $0xc8] sm:$0xf] }
  0xed   :  { %2397 = vmatpush.bf16.msra.mxu0 %v4365_v8  ;;  %2410 = vmatpush.bf16.msra.mxu1 %v4621_v9  ;;  %v5274_v19 = vld [vmem:[#allocation11 + $0x684] sm:$0xf]  ;;  %v4301_v20 = vor.u32 %v5210_v17, %v4298_v18  ;;  %v4048_v59 = vld [vmem:[#allocation11 + $0x288] sm:$0xf] }
  0xee   :  { %v4557_v22 = vor.u32 %v5274_v19, %v4554_v21  ;;  %v5111_v21 = vld [vmem:[#allocation11 + $0x164] sm:$0xf0] }
  0xf0   :  { %2372 = vmatpush.bf16.msrb.mxu2 %v3821_v28  ;;  %2385 = vmatpush.bf16.msrb.mxu3 %v4077_v32  ;;  %v5266_v28 = vld [vmem:[#allocation11 + $0x644] sm:$0xf] }
  0xf1   :  { %2398 = vmatpush.bf16.msra.mxu0 %v4333_v12  ;;  %2411 = vmatpush.bf16.msra.mxu1 %v4589_v15  ;;  %v4525_v32 = vor.u32 %v5266_v28, %v4522_v30  ;;  %v5183_v12 = vld [vmem:[#allocation11 + $0x3a4] sm:$0xf0] }
  0xf2   :  { %v4177_v19 = vor.u32 %v5183_v12, %v4176_v11  ;;  %v4400_v11 = vld [vmem:[#allocation11 + $0x548] sm:$0xf] }
  0xf3   :  { %v5239_v12 = vld [vmem:[#allocation11 + $0x564] sm:$0xf0] }
  0xf4   :  { %2373 = vmatpush.bf16.msrb.mxu2 %v3789_v43  ;;  %2386 = vmatpush.bf16.msrb.mxu3 %v4045_v40 }
  0xf5   :  { %2399 = vmatpush.bf16.msra.mxu0 %v4301_v20  ;;  %2412 = vmatpush.bf16.msra.mxu1 %v4557_v22  ;;  %v3888_v20 = vld [vmem:[#allocation11 + $0x148] sm:$0xf] }
  0xf6   :  { %v4144_v22 = vld [vmem:[#allocation11 + $0x348] sm:$0xf]  ;;  %v3889_v27 = vor.u32 %v5111_v21, %v3888_v20  ;;  %v4401_v20 = vor.u32 %v5239_v12, %v4400_v11 }
  0xf7   :  { %v4240_v11 = vld [vmem:[#allocation11 + $0x408] sm:$0xf] }
  0xf8   :  { %2374 = vmatpush.bf16.msrb.mxu2 %v3757_v53  ;;  %2387 = vmatpush.bf16.msrb.mxu3 %v4013_v57  ;;  %v5199_v12 = vld [vmem:[#allocation11 + $0x424] sm:$0xf0] }
  0xf9   :  { %2400 = vmatpush.bf16.msra.mxu0 %v4269_v29  ;;  %2413 = vmatpush.bf16.msra.mxu1 %v4525_v32  ;;  %v3856_v29 = vld [vmem:[#allocation11 + $0x108] sm:$0xf] }
  0xfa   :  { %v5103_v32 = vld [vmem:[#allocation11 + $0x124] sm:$0xf0] }
  0xfc   :  { %2375 = vmatpush.bf16.msrb.mxu2 %v3725_v1  ;;  %2388 = vmatpush.bf16.msrb.mxu3 %v3981_v4  ;;  %v4209_v4 = vor.u32 %v5191_v61, %v4208_v60  ;;  %v5151_v60 = vld [vmem:[#allocation11 + $0x2a4] sm:$0xf0] }
  0xfd   :  { %2401 = vmatpush.bf16.msra.mxu0 %v4237_v39  ;;  %2414 = vmatpush.bf16.msra.mxu1 %v4493_v44  ;;  %v4432_v61 = vld [vmem:[#allocation11 + $0x588] sm:$0xf] }
 0x13c   :  { %v659_v24 = vpop.f32.mrf.mxu0  ;;  %v672_v25 = vpop.f32.mrf.mxu1 }
 0x13d   :  { %v660_v33 = vadd.f32 %v659_v24, %v290_v23  ;;  %v5175_v23 = vld [vmem:[#allocation11 + $0x364] sm:$0xf0] }
 0x13e   :  { %v4145_v28 = vor.u32 %v5175_v23, %v4144_v22  ;;  %v5135_v22 = vld [vmem:[#allocation11 + $0x224] sm:$0xf0] }
 0x13f   :  { %v673_v45 = vadd.f32 %v672_v25, %v660_v33  ;;  %v4112_v33 = vld [vmem:[#allocation11 + $0x308] sm:$0xf] }
 0x140   :  { %v4113_v39 = vor.u32 %v5167_v34, %v4112_v33  ;;  %v4368_v23 = vld [vmem:[#allocation11 + $0x508] sm:$0xf] }
 0x141   :  { %v633_v37 = vpop.f32.mrf.mxu2  ;;  %v646_v38 = vpop.f32.mrf.mxu3 }
 0x142   :  { %v634_v43 = vadd.f32 %v633_v37, %v289_v31 }
 0x144   :  { %v647_v46 = vadd.f32 %v646_v38, %v634_v43  ;;  %v661_v40 = vpop.f32.mrf.mxu0  ;;  %v674_v47 = vpop.f32.mrf.mxu1  ;;  %v3857_v38 = vor.u32 %v5103_v32, %v3856_v29  ;;  %v5095_v43 = vld [vmem:[#allocation11 + $0xe4] sm:$0xf0]  ;;  %v5187_v29 = vld [vmem:[#allocation11 + $0x3cc] sm:$0xf] }
 0x145   :  { %v4464_v40 = vld [vmem:[#allocation11 + $0x5c8] sm:$0xf] }
 0x146   :  { %v728_v41 = vpack.c.bf16 %v673_v45, %v647_v46  ;;  %v4080_v45 = vld [vmem:[#allocation11 + $0x2c8] sm:$0xf] }
 0x147   :  { %v5159_v46 = vld [vmem:[#allocation11 + $0x2e4] sm:$0xf0] }
 0x148   :  { %v730_v48 = vunpack.c.l.bf16 %v728_v41  ;;  %v731_v49 = vunpack.c.h.bf16 %v728_v41 }
 0x149   :  { %v635_v50 = vpop.f32.mrf.mxu2  ;;  %v648_v51 = vpop.f32.mrf.mxu3 }
 0x14a   :  { %vm734_vm4 = vcmp.gt.f32.partialorder %v730_v48, 0.0  ;;  %vm735_vm5 = vcmp.gt.f32.partialorder %v731_v49, 0.0  ;;  %v738_v52 = vmul.f32 0.20019531, %v730_v48  ;;  %v739_v53 = vmul.f32 0.20019531, %v731_v49  ;;  %v5255_v48 = vld [vmem:[#allocation11 + $0x5e4] sm:$0xf0] }
 0x14b   :  { %vm744_vm6 = vmpackc.low %vm735_vm5, %vm734_vm4  ;;  %v4720_v49 = vld [vmem:[#allocation11 + $0x7c8] sm:$0xf] }
 0x14c   :  { %v742_v54 = vpack.c.bf16 %v739_v53, %v738_v52  ;;  %v711_v56 = vpop.f32.mrf.mxu0  ;;  %v724_v57 = vpop.f32.mrf.mxu1  ;;  %v5319_v50 = vld [vmem:[#allocation11 + $0x7e4] sm:$0xf0]  ;;  %v3825_v53 = vor.u32 %v5095_v43, %v3824_v42  ;;  %v5115_v43 = vld [vmem:[#allocation11 + $0x18c] sm:$0xf] }
 0x14d   :  { %v712_v2 = vadd.f32 %v711_v56, %v292_v55  ;;  %v3792_v55 = vld [vmem:[#allocation11 + $0x88] sm:$0xf]  ;;  %v4721_v58 = vor.u32 %v5319_v50, %v4720_v49 }
 0x14e   :  { %v746_v62 = vsel %vm744_vm6, %v728_v41, %v742_v54  ;;  %v4081_v54 = vor.u32 %v5159_v46, %v4080_v45  ;;  %v5087_v56 = vld [vmem:[#allocation11 + $0xa4] sm:$0xf0]  ;;  %v5179_v45 = vld [vmem:[#allocation11 + $0x38c] sm:$0xf] }
 0x14f   :  { %v1024_v0 = vunpack.c.l.b16 %v746_v62  ;;  %v1025_v1 = vunpack.c.h.b16 %v746_v62  ;;  %v725_v15 = vadd.f32 %v724_v57, %v712_v2  ;;  %v4465_v57 = vor.u32 %v5255_v48, %v4464_v40  ;;  %v5247_v62 = vld [vmem:[#allocation11 + $0x5a4] sm:$0xf0]  ;;  %v4178_v46 = vld [vmem:[#allocation11 + $0x3a8] sm:$0xf0] }
 0x150   :  { %v4049_v2 = vor.u32 %v5151_v60, %v4048_v59  ;;  %v4433_v5 = vor.u32 %v5247_v62, %v4432_v61  ;;  %v5287_v42 = vld [vmem:[#allocation11 + $0x6e4] sm:$0xf0]  ;;  %v4181_v50 = vor.u32 %v5179_v45, %v4178_v46 }
 0x151   :  { %v5745_v7 = vpack.c.b16 %v1024_v0, %v1024_v0  ;;  %v5747_v8 = vpack.c.b16 %v1025_v1, %v1025_v1  ;;  %v685_v9 = vpop.f32.mrf.mxu2  ;;  %v698_v10 = vpop.f32.mrf.mxu3  ;;  %v5311_v0 = vld [vmem:[#allocation11 + $0x7a4] sm:$0xf0]  ;;  %v3793_v1 = vor.u32 %v5087_v56, %v3792_v55  ;;  %v5107_v55 = vld [vmem:[#allocation11 + $0x14c] sm:$0xf] }
 0x152   :  { %v686_v13 = vadd.f32 %v685_v9, %v291_v63  ;;  %v4688_v63 = vld [vmem:[#allocation11 + $0x788] sm:$0xf]  ;;  %v3890_v56 = vld [vmem:[#allocation11 + $0x168] sm:$0xf0] }
 0x153   :  { %2324 = vmatmul.bf16.vlgmr.msra.gmra.mxu2 %v5745_v7  ;;  %2337 = vmatmul.bf16.vlgmr.msra.gmra.mxu3 %v5747_v8  ;;  %v4689_v6 = vor.u32 %v5311_v0, %v4688_v63  ;;  %v4016_v9 = vld [vmem:[#allocation11 + $0x248] sm:$0xf]  ;;  %v3893_v63 = vor.u32 %v5107_v55, %v3890_v56  ;;  %v5067_v55 = vld [vmem:[#allocation11 + $0xc] sm:$0xf] }
 0x154   :  { %v699_v16 = vadd.f32 %v698_v10, %v686_v13  ;;  %v713_v17 = vpop.f32.mrf.mxu0  ;;  %v726_v18 = vpop.f32.mrf.mxu1  ;;  %2420 = vmatpush.bf16.msra.mxu2 %v3953_v3  ;;  %2433 = vmatpush.bf16.msra.mxu3 %v4209_v4  ;;  %v3760_v3 = vld [vmem:[#allocation11 + $0x48] sm:$0xf]  ;;  %v3730_v56 = vld [vmem:[#allocation11 + $0x28] sm:$0xf0] }
 0x155   :  { %v5079_v4 = vld [vmem:[#allocation11 + $0x64] sm:$0xf0] }
 0x156   :  { %v729_v24 = vpack.c.bf16 %v725_v15, %v699_v16  ;;  %v5143_v10 = vld [vmem:[#allocation11 + $0x264] sm:$0xf0]  ;;  %v3761_v15 = vor.u32 %v5079_v4, %v3760_v3  ;;  %v5099_v3 = vld [vmem:[#allocation11 + $0x10c] sm:$0xf] }
 0x157   :  { %v4656_v13 = vld [vmem:[#allocation11 + $0x748] sm:$0xf]  ;;  %v4017_v16 = vor.u32 %v5143_v10, %v4016_v9  ;;  %v3858_v4 = vld [vmem:[#allocation11 + $0x128] sm:$0xf0] }
 0x158   :  { %v732_v25 = vunpack.c.l.bf16 %v729_v24  ;;  %v733_v26 = vunpack.c.h.bf16 %v729_v24  ;;  %2421 = vmatpush.bf16.msra.mxu2 %v3921_v14  ;;  %2434 = vmatpush.bf16.msra.mxu3 %v4177_v19  ;;  %v5303_v14 = vld [vmem:[#allocation11 + $0x764] sm:$0xf0] }
 0x159   :  { %v687_v30 = vpop.f32.mrf.mxu2  ;;  %v700_v31 = vpop.f32.mrf.mxu3  ;;  %v3728_v17 = vld [vmem:[#allocation11 + $0x8] sm:$0xf]  ;;  %v4657_v21 = vor.u32 %v5303_v14, %v4656_v13  ;;  %v3861_v14 = vor.u32 %v5099_v3, %v3858_v4  ;;  %v4216_v3 = vld [vmem:[#allocation11 + $0x3d0] sm:$0xf] }
 0x15a   :  { %vm736_vm7 = vcmp.gt.f32.partialorder %v732_v25, 0.0  ;;  %vm737_vm8 = vcmp.gt.f32.partialorder %v733_v26, 0.0  ;;  %v740_v35 = vmul.f32 0.20019531, %v732_v25  ;;  %v741_v36 = vmul.f32 0.20019531, %v733_v26  ;;  %v5071_v18 = vld [vmem:[#allocation11 + $0x24] sm:$0xf0] }
 0x15b   :  { %vm745_vm9 = vmpackc.low %vm737_vm8, %vm736_vm7  ;;  %v3984_v19 = vld [vmem:[#allocation11 + $0x208] sm:$0xf]  ;;  %v4210_v30 = vld [vmem:[#allocation11 + $0x3e8] sm:$0xf0]  ;;  %v3729_v31 = vor.u32 %v5071_v18, %v3728_v17 }
 0x15c   :  { %v743_v37 = vpack.c.bf16 %v741_v36, %v740_v35  ;;  %2422 = vmatpush.bf16.msra.mxu2 %v3889_v27  ;;  %2435 = vmatpush.bf16.msra.mxu3 %v4145_v28  ;;  %v4624_v25 = vld [vmem:[#allocation11 + $0x708] sm:$0xf]  ;;  %v5123_v27 = vld [vmem:[#allocation11 + $0x1cc] sm:$0xf]  ;;  %v3985_v32 = vor.u32 %v5135_v22, %v3984_v19  ;;  %v5192_v4 = vld [vmem:[#allocation11 + $0x3ec] sm:$0xf0] }
 0x15d   :  { %v5295_v26 = vld [vmem:[#allocation11 + $0x724] sm:$0xf0]  ;;  %v3954_v28 = vld [vmem:[#allocation11 + $0x1e8] sm:$0xf0] }
 0x15e   :  { %v747_v44 = vsel %vm745_vm9, %v729_v24, %v743_v37  ;;  %v5231_v24 = vld [vmem:[#allocation11 + $0x524] sm:$0xf0]  ;;  %v4625_v34 = vor.u32 %v5295_v26, %v4624_v25  ;;  %v3957_v37 = vor.u32 %v5123_v27, %v3954_v28  ;;  %v5091_v17 = vld [vmem:[#allocation11 + $0xcc] sm:$0xf]  ;;  %v4241_v25 = vor.u32 %v5199_v12, %v4240_v11 }
 0x15f   :  { %v1026_v47 = vunpack.c.l.b16 %v747_v44  ;;  %v1027_v41 = vunpack.c.h.b16 %v747_v44  ;;  %v4369_v33 = vor.u32 %v5231_v24, %v4368_v23  ;;  %v4336_v35 = vld [vmem:[#allocation11 + $0x4c8] sm:$0xf]  ;;  %v3922_v44 = vld [vmem:[#allocation11 + $0x1a8] sm:$0xf0] }
 0x160   :  { %2423 = vmatpush.bf16.msra.mxu2 %v3857_v38  ;;  %2436 = vmatpush.bf16.msra.mxu3 %v4113_v39  ;;  %v5223_v36 = vld [vmem:[#allocation11 + $0x4e4] sm:$0xf0]  ;;  %v4213_v38 = vor.u32 %v5187_v29, %v4210_v30  ;;  %v3925_v49 = vor.u32 %v5115_v43, %v3922_v44  ;;  %v3826_v18 = vld [vmem:[#allocation11 + $0xe8] sm:$0xf0] }
 0x161   :  { %v5751_v51 = vpack.c.b16 %v1026_v47, %v1026_v47  ;;  %v5753_v52 = vpack.c.b16 %v1027_v41, %v1027_v41  ;;  %v4592_v39 = vld [vmem:[#allocation11 + $0x6c8] sm:$0xf]  ;;  %v4337_v40 = vor.u32 %v5223_v36, %v4336_v35  ;;  %v5155_v19 = vld [vmem:[#allocation11 + $0x2cc] sm:$0xf]  ;;  %v3829_v27 = vor.u32 %v5091_v17, %v3826_v18  ;;  %v3928_v17 = vld [vmem:[#allocation11 + $0x190] sm:$0xf] }
 0x162   :  { %v4593_v47 = vor.u32 %v5287_v42, %v4592_v39  ;;  %v4304_v41 = vld [vmem:[#allocation11 + $0x488] sm:$0xf]  ;;  %v4466_v22 = vld [vmem:[#allocation11 + $0x5e8] sm:$0xf0]  ;;  %v5120_v18 = vld [vmem:[#allocation11 + $0x1ac] sm:$0xf0] }
 0x163   :  { %2350 = vmatmul.bf16.vlgmr.msrb.gmra.mxu0 %v5751_v51  ;;  %2363 = vmatmul.bf16.vlgmr.msrb.gmra.mxu1 %v5753_v52  ;;  %v5215_v48 = vld [vmem:[#allocation11 + $0x4a4] sm:$0xf0]  ;;  %v5315_v23 = vld [vmem:[#allocation11 + $0x7cc] sm:$0xf] }
 0x164   :  { %2376 = vmatmul.bf16.vlgmr.msrb.gmra.mxu2 %v5745_v7  ;;  %2389 = vmatmul.bf16.vlgmr.msrb.gmra.mxu3 %v5747_v8  ;;  %v4305_v59 = vor.u32 %v5215_v48, %v4304_v41  ;;  %v4272_v61 = vld [vmem:[#allocation11 + $0x448] sm:$0xf]  ;;  %v4722_v24 = vld [vmem:[#allocation11 + $0x7e8] sm:$0xf0] }
 0x165   :  { %2424 = vmatpush.bf16.msra.mxu2 %v3825_v53  ;;  %2437 = vmatpush.bf16.msra.mxu3 %v4081_v54  ;;  %v4560_v53 = vld [vmem:[#allocation11 + $0x688] sm:$0xf]  ;;  %v5083_v29 = vld [vmem:[#allocation11 + $0x8c] sm:$0xf] }
 0x166   :  { %2446 = vmatpush.bf16.msrb.mxu0 %v4465_v57  ;;  %2459 = vmatpush.bf16.msrb.mxu1 %v4721_v58  ;;  %v5279_v54 = vld [vmem:[#allocation11 + $0x6a4] sm:$0xf0]  ;;  %v5171_v57 = vld [vmem:[#allocation11 + $0x34c] sm:$0xf] }
 0x167   :  { %v4146_v58 = vld [vmem:[#allocation11 + $0x368] sm:$0xf0]  ;;  %v4561_v60 = vor.u32 %v5279_v54, %v4560_v53  ;;  %v5207_v62 = vld [vmem:[#allocation11 + $0x464] sm:$0xf0] }
 0x168   :  { %v4149_v0 = vor.u32 %v5171_v57, %v4146_v58  ;;  %v4273_v9 = vor.u32 %v5207_v62, %v4272_v61  ;;  %v4496_v13 = vld [vmem:[#allocation11 + $0x608] sm:$0xf]  ;;  %v3794_v30 = vld [vmem:[#allocation11 + $0xa8] sm:$0xf0] }
 0x169   :  { %2425 = vmatpush.bf16.msra.mxu2 %v3793_v1  ;;  %2438 = vmatpush.bf16.msra.mxu3 %v4049_v2  ;;  %v4528_v1 = vld [vmem:[#allocation11 + $0x648] sm:$0xf]  ;;  %v5243_v35 = vld [vmem:[#allocation11 + $0x58c] sm:$0xf]  ;;  %v3797_v39 = vor.u32 %v5083_v29, %v3794_v30  ;;  %v3896_v29 = vld [vmem:[#allocation11 + $0x150] sm:$0xf] }
 0x16a   :  { %2447 = vmatpush.bf16.msrb.mxu0 %v4433_v5  ;;  %2460 = vmatpush.bf16.msrb.mxu1 %v4689_v6  ;;  %v5271_v2 = vld [vmem:[#allocation11 + $0x664] sm:$0xf0]  ;;  %v5163_v5 = vld [vmem:[#allocation11 + $0x30c] sm:$0xf]  ;;  %v5112_v30 = vld [vmem:[#allocation11 + $0x16c] sm:$0xf0] }
 0x16b   :  { %v4114_v6 = vld [vmem:[#allocation11 + $0x328] sm:$0xf0]  ;;  %v4529_v10 = vor.u32 %v5271_v2, %v4528_v1  ;;  %v3960_v1 = vld [vmem:[#allocation11 + $0x1d0] sm:$0xf] }
 0x16c   :  { %v4434_v36 = vld [vmem:[#allocation11 + $0x5a8] sm:$0xf0]  ;;  %v5128_v2 = vld [vmem:[#allocation11 + $0x1ec] sm:$0xf0] }
 0x16d   :  { %2426 = vmatpush.bf16.msra.mxu2 %v3761_v15  ;;  %2439 = vmatpush.bf16.msra.mxu3 %v4017_v16  ;;  %v4117_v15 = vor.u32 %v5163_v5, %v4114_v6  ;;  %v5263_v16 = vld [vmem:[#allocation11 + $0x624] sm:$0xf0]  ;;  %v5075_v43 = vld [vmem:[#allocation11 + $0x4c] sm:$0xf]  ;;  %v4437_v45 = vor.u32 %v5243_v35, %v4434_v36  ;;  %v3733_v5 = vor.u32 %v5067_v55, %v3730_v56  ;;  %v3832_v55 = vld [vmem:[#allocation11 + $0xd0] sm:$0xf] }
 0x16e   :  { %2448 = vmatpush.bf16.msrb.mxu0 %v4401_v20  ;;  %2461 = vmatpush.bf16.msrb.mxu1 %v4657_v21  ;;  %v4082_v20 = vld [vmem:[#allocation11 + $0x2e8] sm:$0xf0]  ;;  %v4497_v26 = vor.u32 %v5263_v16, %v4496_v13  ;;  %v3961_v13 = vor.u32 %v5128_v2, %v3960_v1  ;;  %v5096_v56 = vld [vmem:[#allocation11 + $0xec] sm:$0xf0] }
 0x16f   :  { %v5251_v21 = vld [vmem:[#allocation11 + $0x5cc] sm:$0xf]  ;;  %v4085_v28 = vor.u32 %v5155_v19, %v4082_v20  ;;  %v4184_v19 = vld [vmem:[#allocation11 + $0x390] sm:$0xf]  ;;  %v3833_v1 = vor.u32 %v5096_v56, %v3832_v55  ;;  %v5116_v55 = vld [vmem:[#allocation11 + $0x194] sm:$0xf] }
 0x170   :  { %v3762_v44 = vld [vmem:[#allocation11 + $0x68] sm:$0xf0]  ;;  %v5184_v20 = vld [vmem:[#allocation11 + $0x3ac] sm:$0xf0]  ;;  %v3930_v56 = vld [vmem:[#allocation11 + $0x1b0] sm:$0xf0] }
 0x171   :  { %2427 = vmatpush.bf16.msra.mxu2 %v3729_v31  ;;  %2440 = vmatpush.bf16.msra.mxu3 %v3985_v32  ;;  %v4469_v31 = vor.u32 %v5251_v21, %v4466_v22  ;;  %v4725_v32 = vor.u32 %v5315_v23, %v4722_v24  ;;  %v5235_v41 = vld [vmem:[#allocation11 + $0x54c] sm:$0xf]  ;;  %v3765_v53 = vor.u32 %v5075_v43, %v3762_v44  ;;  %v3864_v43 = vld [vmem:[#allocation11 + $0x110] sm:$0xf] }
 0x172   :  { %2449 = vmatpush.bf16.msrb.mxu0 %v4369_v33  ;;  %2462 = vmatpush.bf16.msrb.mxu1 %v4625_v34  ;;  %v5147_v33 = vld [vmem:[#allocation11 + $0x28c] sm:$0xf]  ;;  %v5104_v44 = vld [vmem:[#allocation11 + $0x12c] sm:$0xf0] }
 0x173   :  { %2402 = vmatmul.bf16.vlgmr.msra.gmra.mxu0 %v5751_v51  ;;  %2415 = vmatmul.bf16.vlgmr.msra.gmra.mxu1 %v5753_v52  ;;  %v4050_v34 = vld [vmem:[#allocation11 + $0x2a8] sm:$0xf0] }
 0x174   :  { %2428 = vmatmul.bf16.vlgmr.msra.gmra.mxu2 %v5745_v7  ;;  %2441 = vmatmul.bf16.vlgmr.msra.gmra.mxu3 %v5747_v8  ;;  %v4053_v42 = vor.u32 %v5147_v33, %v4050_v34  ;;  %v4402_v48 = vld [vmem:[#allocation11 + $0x568] sm:$0xf0] }
 0x175   :  { %2472 = vmatpush.bf16.msrb.mxu2 %v3957_v37  ;;  %2485 = vmatpush.bf16.msrb.mxu3 %v4213_v38  ;;  %v5307_v37 = vld [vmem:[#allocation11 + $0x78c] sm:$0xf]  ;;  %v4405_v58 = vor.u32 %v5235_v41, %v4402_v48 }
 0x176   :  { %2450 = vmatpush.bf16.msrb.mxu0 %v4337_v40  ;;  %2463 = vmatpush.bf16.msrb.mxu1 %v4593_v47  ;;  %v4690_v38 = vld [vmem:[#allocation11 + $0x7a8] sm:$0xf0] }
 0x177   :  { %v4693_v46 = vor.u32 %v5307_v37, %v4690_v38  ;;  %v5139_v40 = vld [vmem:[#allocation11 + $0x24c] sm:$0xf]  ;;  %v3897_v37 = vor.u32 %v5112_v30, %v3896_v29  ;;  %v3736_v29 = vld [vmem:[#allocation11 + $0x10] sm:$0xf] }
 0x178   :  { %v4018_v47 = vld [vmem:[#allocation11 + $0x268] sm:$0xf0]  ;;  %v5072_v30 = vld [vmem:[#allocation11 + $0x2c] sm:$0xf0] }
 0x179   :  { %2473 = vmatpush.bf16.msrb.mxu2 %v3925_v49  ;;  %2486 = vmatpush.bf16.msrb.mxu3 %v4181_v50  ;;  %v5299_v49 = vld [vmem:[#allocation11 + $0x74c] sm:$0xf]  ;;  %v4021_v54 = vor.u32 %v5139_v40, %v4018_v47 }
 0x17a   :  { %2451 = vmatpush.bf16.msrb.mxu0 %v4305_v59  ;;  %2464 = vmatpush.bf16.msrb.mxu1 %v4561_v60  ;;  %v4658_v50 = vld [vmem:[#allocation11 + $0x768] sm:$0xf0] }
 0x17b   :  { %v5131_v57 = vld [vmem:[#allocation11 + $0x20c] sm:$0xf]  ;;  %v4661_v59 = vor.u32 %v5299_v49, %v4658_v50  ;;  %v3865_v50 = vor.u32 %v5104_v44, %v3864_v43  ;;  %v5188_v43 = vld [vmem:[#allocation11 + $0x3d4] sm:$0xf] }
 0x17c   :  { %v3986_v60 = vld [vmem:[#allocation11 + $0x228] sm:$0xf0]  ;;  %v4218_v44 = vld [vmem:[#allocation11 + $0x3f0] sm:$0xf0] }
 0x17d   :  { %2474 = vmatpush.bf16.msrb.mxu2 %v3893_v63  ;;  %2487 = vmatpush.bf16.msrb.mxu3 %v4149_v0  ;;  %v5227_v61 = vld [vmem:[#allocation11 + $0x50c] sm:$0xf]  ;;  %v3989_v6 = vor.u32 %v5131_v57, %v3986_v60  ;;  %v4088_v57 = vld [vmem:[#allocation11 + $0x2d0] sm:$0xf] }
 0x17e   :  { %2452 = vmatpush.bf16.msrb.mxu0 %v4273_v9  ;;  %2465 = vmatpush.bf16.msrb.mxu1 %v4529_v10  ;;  %v4370_v62 = vld [vmem:[#allocation11 + $0x528] sm:$0xf0]  ;;  %v5256_v60 = vld [vmem:[#allocation11 + $0x5ec] sm:$0xf0] }
 0x17f   :  { %v5291_v63 = vld [vmem:[#allocation11 + $0x70c] sm:$0xf]  ;;  %v4373_v9 = vor.u32 %v5227_v61, %v4370_v62  ;;  %v4728_v61 = vld [vmem:[#allocation11 + $0x7d0] sm:$0xf] }
 0x180   :  { %v4626_v0 = vld [vmem:[#allocation11 + $0x728] sm:$0xf0]  ;;  %v5320_v62 = vld [vmem:[#allocation11 + $0x7ec] sm:$0xf0] }
 0x181   :  { %2475 = vmatpush.bf16.msrb.mxu2 %v3861_v14  ;;  %2488 = vmatpush.bf16.msrb.mxu3 %v4117_v15  ;;  %v4629_v10 = vor.u32 %v5291_v63, %v4626_v0  ;;  %v5219_v11 = vld [vmem:[#allocation11 + $0x4cc] sm:$0xf]  ;;  %v4217_v14 = vor.u32 %v5192_v4, %v4216_v3  ;;  %v3800_v3 = vld [vmem:[#allocation11 + $0x90] sm:$0xf] }
 0x182   :  { %2453 = vmatpush.bf16.msrb.mxu0 %v4241_v25  ;;  %2466 = vmatpush.bf16.msrb.mxu1 %v4497_v26  ;;  %v4338_v12 = vld [vmem:[#allocation11 + $0x4e8] sm:$0xf0]  ;;  %v3929_v25 = vor.u32 %v5120_v18, %v3928_v17  ;;  %v4185_v26 = vor.u32 %v5184_v20, %v4184_v19  ;;  %v5088_v4 = vld [vmem:[#allocation11 + $0xac] sm:$0xf0] }
 0x183   :  { %v5283_v15 = vld [vmem:[#allocation11 + $0x6cc] sm:$0xf]  ;;  %v4341_v21 = vor.u32 %v5219_v11, %v4338_v12  ;;  %v4440_v11 = vld [vmem:[#allocation11 + $0x590] sm:$0xf] }
 0x184   :  { %v4594_v16 = vld [vmem:[#allocation11 + $0x6e8] sm:$0xf0]  ;;  %v5248_v12 = vld [vmem:[#allocation11 + $0x5ac] sm:$0xf0] }
 0x185   :  { %2476 = vmatpush.bf16.msrb.mxu2 %v3829_v27  ;;  %2489 = vmatpush.bf16.msrb.mxu3 %v4085_v28  ;;  %v4597_v22 = vor.u32 %v5283_v15, %v4594_v16  ;;  %v5211_v23 = vld [vmem:[#allocation11 + $0x48c] sm:$0xf]  ;;  %v3801_v15 = vor.u32 %v5088_v4, %v3800_v3  ;;  %v3768_v17 = vld [vmem:[#allocation11 + $0x50] sm:$0xf]  ;;  %v4441_v19 = vor.u32 %v5248_v12, %v4440_v11  ;;  %v5108_v3 = vld [vmem:[#allocation11 + $0x154] sm:$0xf] }
 0x186   :  { %2498 = vmatpush.bf16.msra.mxu0 %v4469_v31  ;;  %2511 = vmatpush.bf16.msra.mxu1 %v4725_v32  ;;  %v4306_v24 = vld [vmem:[#allocation11 + $0x4a8] sm:$0xf0]  ;;  %v4152_v31 = vld [vmem:[#allocation11 + $0x350] sm:$0xf]  ;;  %v3898_v4 = vld [vmem:[#allocation11 + $0x170] sm:$0xf0] }
 0x187   :  { %2454 = vmatmul.bf16.vlgmr.msrb.gmra.mxu0 %v5751_v51  ;;  %2467 = vmatmul.bf16.vlgmr.msrb.gmra.mxu1 %v5753_v52  ;;  %v5275_v27 = vld [vmem:[#allocation11 + $0x68c] sm:$0xf]  ;;  %v5176_v32 = vld [vmem:[#allocation11 + $0x36c] sm:$0xf0]  ;;  %v4309_v33 = vor.u32 %v5211_v23, %v4306_v24 }
 0x188   :  { %v4562_v28 = vld [vmem:[#allocation11 + $0x6a8] sm:$0xf0]  ;;  %v4153_v38 = vor.u32 %v5176_v32, %v4152_v31  ;;  %v5080_v18 = vld [vmem:[#allocation11 + $0x6c] sm:$0xf0] }
 0x189   :  { %2477 = vmatpush.bf16.msrb.mxu2 %v3797_v39  ;;  %2490 = vmatpush.bf16.msrb.mxu3 %v4053_v42  ;;  %v4565_v34 = vor.u32 %v5275_v27, %v4562_v28  ;;  %v5203_v35 = vld [vmem:[#allocation11 + $0x44c] sm:$0xf]  ;;  %v4408_v23 = vld [vmem:[#allocation11 + $0x550] sm:$0xf]  ;;  %v3769_v27 = vor.u32 %v5080_v18, %v3768_v17  ;;  %v5100_v17 = vld [vmem:[#allocation11 + $0x114] sm:$0xf] }
 0x18a   :  { %2499 = vmatpush.bf16.msra.mxu0 %v4437_v45  ;;  %2512 = vmatpush.bf16.msra.mxu1 %v4693_v46  ;;  %v4274_v36 = vld [vmem:[#allocation11 + $0x468] sm:$0xf0]  ;;  %v4120_v45 = vld [vmem:[#allocation11 + $0x310] sm:$0xf]  ;;  %v3866_v18 = vld [vmem:[#allocation11 + $0x130] sm:$0xf0] }
 0x18b   :  { %v5267_v39 = vld [vmem:[#allocation11 + $0x64c] sm:$0xf]  ;;  %v5168_v46 = vld [vmem:[#allocation11 + $0x32c] sm:$0xf0]  ;;  %v4277_v40 = vor.u32 %v5203_v35, %v4274_v36 }
 0x18c   :  { %v4530_v42 = vld [vmem:[#allocation11 + $0x668] sm:$0xf0]  ;;  %v5240_v24 = vld [vmem:[#allocation11 + $0x56c] sm:$0xf0] }
 0x18d   :  { %2478 = vmatpush.bf16.msrb.mxu2 %v3765_v53  ;;  %2491 = vmatpush.bf16.msrb.mxu3 %v4021_v54  ;;  %v4533_v47 = vor.u32 %v5267_v39, %v4530_v42  ;;  %v5195_v41 = vld [vmem:[#allocation11 + $0x40c] sm:$0xf]  ;;  %v4121_v53 = vor.u32 %v5168_v46, %v4120_v45  ;;  %v3992_v31 = vld [vmem:[#allocation11 + $0x210] sm:$0xf]  ;;  %v4409_v32 = vor.u32 %v5240_v24, %v4408_v23  ;;  %v5124_v39 = vld [vmem:[#allocation11 + $0x1d4] sm:$0xf] }
 0x18e   :  { %2500 = vmatpush.bf16.msra.mxu0 %v4405_v58  ;;  %2513 = vmatpush.bf16.msra.mxu1 %v4661_v59  ;;  %v4242_v48 = vld [vmem:[#allocation11 + $0x428] sm:$0xf0]  ;;  %v5160_v58 = vld [vmem:[#allocation11 + $0x2ec] sm:$0xf0]  ;;  %v3962_v42 = vld [vmem:[#allocation11 + $0x1f0] sm:$0xf0]  ;;  %v3737_v45 = vor.u32 %v5072_v30, %v3736_v29 }
 0x18f   :  { %v5259_v49 = vld [vmem:[#allocation11 + $0x60c] sm:$0xf]  ;;  %v4472_v59 = vld [vmem:[#allocation11 + $0x5d0] sm:$0xf]  ;;  %v4245_v63 = vor.u32 %v5195_v41, %v4242_v48  ;;  %v4089_v2 = vor.u32 %v5160_v58, %v4088_v57  ;;  %v5180_v57 = vld [vmem:[#allocation11 + $0x394] sm:$0xf] }
 0x190   :  { %v4498_v54 = vld [vmem:[#allocation11 + $0x628] sm:$0xf0]  ;;  %v4376_v35 = vld [vmem:[#allocation11 + $0x510] sm:$0xf]  ;;  %v4186_v58 = vld [vmem:[#allocation11 + $0x3b0] sm:$0xf0] }
 0x191   :  { %2479 = vmatpush.bf16.msrb.mxu2 %v3733_v5  ;;  %2492 = vmatpush.bf16.msrb.mxu3 %v3989_v6  ;;  %v4501_v0 = vor.u32 %v5259_v49, %v4498_v54  ;;  %v4473_v5 = vor.u32 %v5256_v60, %v4472_v59  ;;  %v4729_v6 = vor.u32 %v5320_v62, %v4728_v61  ;;  %v5232_v36 = vld [vmem:[#allocation11 + $0x52c] sm:$0xf0]  ;;  %v5092_v29 = vld [vmem:[#allocation11 + $0xd4] sm:$0xf] }
 0x192   :  { %2501 = vmatpush.bf16.msra.mxu0 %v4373_v9  ;;  %2514 = vmatpush.bf16.msra.mxu1 %v4629_v10  ;;  %v4056_v9 = vld [vmem:[#allocation11 + $0x290] sm:$0xf]  ;;  %v3965_v49 = vor.u32 %v5124_v39, %v3962_v42  ;;  %v3834_v30 = vld [vmem:[#allocation11 + $0xf0] sm:$0xf0] }
 0x193   :  { %v5152_v10 = vld [vmem:[#allocation11 + $0x2ac] sm:$0xf0]  ;;  %v3837_v39 = vor.u32 %v5092_v29, %v3834_v30  ;;  %v3936_v29 = vld [vmem:[#allocation11 + $0x198] sm:$0xf] }
 0x194   :  { %2480 = vmatmul.bf16.vlgmr.msrb.gmra.mxu2 %v5745_v7  ;;  %2493 = vmatmul.bf16.vlgmr.msrb.gmra.mxu3 %v5747_v8  ;;  %v4057_v16 = vor.u32 %v5152_v10, %v4056_v9  ;;  %v4344_v41 = vld [vmem:[#allocation11 + $0x4d0] sm:$0xf]  ;;  %v5121_v30 = vld [vmem:[#allocation11 + $0x1b4] sm:$0xf0] }
 0x195   :  { %2524 = vmatpush.bf16.msra.mxu2 %v3961_v13  ;;  %2537 = vmatpush.bf16.msra.mxu3 %v4217_v14  ;;  %v4696_v13 = vld [vmem:[#allocation11 + $0x790] sm:$0xf] }
 0x196   :  { %2502 = vmatpush.bf16.msra.mxu0 %v4341_v21  ;;  %2515 = vmatpush.bf16.msra.mxu1 %v4597_v22  ;;  %v5312_v14 = vld [vmem:[#allocation11 + $0x7ac] sm:$0xf0] }
 0x197   :  { %v4697_v20 = vor.u32 %v5312_v14, %v4696_v13  ;;  %v4024_v21 = vld [vmem:[#allocation11 + $0x250] sm:$0xf]  ;;  %v3901_v13 = vor.u32 %v5108_v3, %v3898_v4  ;;  %v5068_v3 = vld [vmem:[#allocation11 + $0x14] sm:$0xf] }
 0x198   :  { %v5144_v22 = vld [vmem:[#allocation11 + $0x26c] sm:$0xf0]  ;;  %v3738_v4 = vld [vmem:[#allocation11 + $0x30] sm:$0xf0] }
 0x199   :  { %2525 = vmatpush.bf16.msra.mxu2 %v3929_v25  ;;  %2538 = vmatpush.bf16.msra.mxu3 %v4185_v26  ;;  %v4664_v25 = vld [vmem:[#allocation11 + $0x750] sm:$0xf]  ;;  %v4025_v28 = vor.u32 %v5144_v22, %v4024_v21 }
 0x19a   :  { %2503 = vmatpush.bf16.msra.mxu0 %v4309_v33  ;;  %2516 = vmatpush.bf16.msra.mxu1 %v4565_v34  ;;  %v5304_v26 = vld [vmem:[#allocation11 + $0x76c] sm:$0xf0] }
 0x19b   :  { %v4665_v33 = vor.u32 %v5304_v26, %v4664_v25  ;;  %v5136_v34 = vld [vmem:[#allocation11 + $0x22c] sm:$0xf0]  ;;  %v3869_v26 = vor.u32 %v5100_v17, %v3866_v18  ;;  %v4224_v17 = vld [vmem:[#allocation11 + $0x3d8] sm:$0xf] }
 0x19c   :  { %v3993_v46 = vor.u32 %v5136_v34, %v3992_v31  ;;  %v5224_v48 = vld [vmem:[#allocation11 + $0x4ec] sm:$0xf0]  ;;  %v5156_v31 = vld [vmem:[#allocation11 + $0x2d4] sm:$0xf]  ;;  %v5193_v18 = vld [vmem:[#allocation11 + $0x3f4] sm:$0xf0] }
 0x19d   :  { %2526 = vmatpush.bf16.msra.mxu2 %v3897_v37  ;;  %2539 = vmatpush.bf16.msra.mxu3 %v4153_v38  ;;  %v4632_v37 = vld [vmem:[#allocation11 + $0x710] sm:$0xf]  ;;  %v4345_v59 = vor.u32 %v5224_v48, %v4344_v41  ;;  %v4474_v34 = vld [vmem:[#allocation11 + $0x5f0] sm:$0xf0] }
 0x19e   :  { %2504 = vmatpush.bf16.msra.mxu0 %v4277_v40  ;;  %2517 = vmatpush.bf16.msra.mxu1 %v4533_v47  ;;  %v5296_v38 = vld [vmem:[#allocation11 + $0x72c] sm:$0xf0]  ;;  %v4377_v40 = vor.u32 %v5232_v36, %v4376_v35  ;;  %v5316_v35 = vld [vmem:[#allocation11 + $0x7d4] sm:$0xf] }
 0x19f   :  { %v4633_v47 = vor.u32 %v5296_v38, %v4632_v37  ;;  %v5288_v54 = vld [vmem:[#allocation11 + $0x6ec] sm:$0xf0]  ;;  %v4730_v36 = vld [vmem:[#allocation11 + $0x7f0] sm:$0xf0] }
 0x1a0   :  { %v4312_v61 = vld [vmem:[#allocation11 + $0x490] sm:$0xf]  ;;  %v5244_v41 = vld [vmem:[#allocation11 + $0x594] sm:$0xf] }
 0x1a1   :  { %2527 = vmatpush.bf16.msra.mxu2 %v3865_v50  ;;  %2540 = vmatpush.bf16.msra.mxu3 %v4121_v53  ;;  %v4221_v50 = vor.u32 %v5188_v43, %v4218_v44  ;;  %v4600_v53 = vld [vmem:[#allocation11 + $0x6d0] sm:$0xf]  ;;  %v5084_v43 = vld [vmem:[#allocation11 + $0x94] sm:$0xf] }
 0x1a2   :  { %2505 = vmatpush.bf16.msra.mxu0 %v4245_v63  ;;  %2518 = vmatpush.bf16.msra.mxu1 %v4501_v0  ;;  %v4601_v60 = vor.u32 %v5288_v54, %v4600_v53  ;;  %v5216_v62 = vld [vmem:[#allocation11 + $0x4ac] sm:$0xf0]  ;;  %v3933_v63 = vor.u32 %v5116_v55, %v3930_v56  ;;  %v4189_v0 = vor.u32 %v5180_v57, %v4186_v58  ;;  %v3802_v44 = vld [vmem:[#allocation11 + $0xb0] sm:$0xf0] }
 0x1a3   :  { %v4313_v9 = vor.u32 %v5216_v62, %v4312_v61  ;;  %v4280_v11 = vld [vmem:[#allocation11 + $0x450] sm:$0xf]  ;;  %v4442_v48 = vld [vmem:[#allocation11 + $0x5b0] sm:$0xf0]  ;;  %v3805_v53 = vor.u32 %v5084_v43, %v3802_v44  ;;  %v3904_v43 = vld [vmem:[#allocation11 + $0x158] sm:$0xf] }
 0x1a4   :  { %v5208_v12 = vld [vmem:[#allocation11 + $0x46c] sm:$0xf0]  ;;  %v5076_v55 = vld [vmem:[#allocation11 + $0x54] sm:$0xf]  ;;  %v4445_v57 = vor.u32 %v5244_v41, %v4442_v48  ;;  %v5113_v44 = vld [vmem:[#allocation11 + $0x174] sm:$0xf0] }
 0x1a5   :  { %2528 = vmatpush.bf16.msra.mxu2 %v3833_v1  ;;  %2541 = vmatpush.bf16.msra.mxu3 %v4089_v2  ;;  %v4568_v1 = vld [vmem:[#allocation11 + $0x690] sm:$0xf]  ;;  %v4281_v21 = vor.u32 %v5208_v12, %v4280_v11  ;;  %v3770_v56 = vld [vmem:[#allocation11 + $0x70] sm:$0xf0] }
 0x1a6   :  { %2550 = vmatpush.bf16.msrb.mxu0 %v4473_v5  ;;  %2563 = vmatpush.bf16.msrb.mxu1 %v4729_v6  ;;  %v5280_v2 = vld [vmem:[#allocation11 + $0x6ac] sm:$0xf0]  ;;  %v5172_v5 = vld [vmem:[#allocation11 + $0x354] sm:$0xf] }
 0x1a7   :  { %2506 = vmatmul.bf16.vlgmr.msra.gmra.mxu0 %v5751_v51  ;;  %2519 = vmatmul.bf16.vlgmr.msra.gmra.mxu1 %v5753_v52  ;;  %v4154_v6 = vld [vmem:[#allocation11 + $0x370] sm:$0xf0]  ;;  %v4569_v10 = vor.u32 %v5280_v2, %v4568_v1  ;;  %v4248_v23 = vld [vmem:[#allocation11 + $0x410] sm:$0xf]  ;;  %v3773_v1 = vor.u32 %v5076_v55, %v3770_v56  ;;  %v3872_v55 = vld [vmem:[#allocation11 + $0x118] sm:$0xf] }
 0x1a8   :  { %v4157_v14 = vor.u32 %v5172_v5, %v4154_v6  ;;  %v5200_v24 = vld [vmem:[#allocation11 + $0x42c] sm:$0xf0]  ;;  %v5236_v61 = vld [vmem:[#allocation11 + $0x554] sm:$0xf]  ;;  %v5105_v56 = vld [vmem:[#allocation11 + $0x134] sm:$0xf0] }
 0x1a9   :  { %2529 = vmatpush.bf16.msra.mxu2 %v3801_v15  ;;  %2542 = vmatpush.bf16.msra.mxu3 %v4057_v16  ;;  %v4536_v15 = vld [vmem:[#allocation11 + $0x650] sm:$0xf]  ;;  %v4249_v37 = vor.u32 %v5200_v24, %v4248_v23  ;;  %v4410_v62 = vld [vmem:[#allocation11 + $0x570] sm:$0xf0] }
 0x1aa   :  { %2551 = vmatpush.bf16.msrb.mxu0 %v4441_v19  ;;  %2564 = vmatpush.bf16.msrb.mxu1 %v4697_v20  ;;  %v5272_v16 = vld [vmem:[#allocation11 + $0x66c] sm:$0xf0]  ;;  %v5164_v19 = vld [vmem:[#allocation11 + $0x314] sm:$0xf]  ;;  %v4413_v6 = vor.u32 %v5236_v61, %v4410_v62 }
 0x1ab   :  { %v4122_v20 = vld [vmem:[#allocation11 + $0x330] sm:$0xf0]  ;;  %v4537_v22 = vor.u32 %v5272_v16, %v4536_v15  ;;  %v4504_v25 = vld [vmem:[#allocation11 + $0x610] sm:$0xf]  ;;  %v3968_v15 = vld [vmem:[#allocation11 + $0x1d8] sm:$0xf] }
 0x1ac   :  { %v5132_v5 = vld [vmem:[#allocation11 + $0x214] sm:$0xf]  ;;  %v5129_v16 = vld [vmem:[#allocation11 + $0x1f4] sm:$0xf0] }
 0x1ad   :  { %2530 = vmatpush.bf16.msra.mxu2 %v3769_v27  ;;  %2543 = vmatpush.bf16.msra.mxu3 %v4025_v28  ;;  %v4125_v27 = vor.u32 %v5164_v19, %v4122_v20  ;;  %v5264_v28 = vld [vmem:[#allocation11 + $0x62c] sm:$0xf0]  ;;  %v5228_v11 = vld [vmem:[#allocation11 + $0x514] sm:$0xf]  ;;  %v3741_v19 = vor.u32 %v5068_v3, %v3738_v4  ;;  %v3840_v3 = vld [vmem:[#allocation11 + $0xd8] sm:$0xf] }
 0x1ae   :  { %2552 = vmatpush.bf16.msrb.mxu0 %v4409_v32  ;;  %2565 = vmatpush.bf16.msrb.mxu1 %v4665_v33  ;;  %v4090_v32 = vld [vmem:[#allocation11 + $0x2f0] sm:$0xf0]  ;;  %v4505_v38 = vor.u32 %v5264_v28, %v4504_v25  ;;  %v3969_v25 = vor.u32 %v5129_v16, %v3968_v15  ;;  %v5097_v4 = vld [vmem:[#allocation11 + $0xf4] sm:$0xf0] }
 0x1af   :  { %v5252_v33 = vld [vmem:[#allocation11 + $0x5d4] sm:$0xf]  ;;  %v4093_v42 = vor.u32 %v5156_v31, %v4090_v32  ;;  %v4192_v31 = vld [vmem:[#allocation11 + $0x398] sm:$0xf] }
 0x1b0   :  { %v4378_v12 = vld [vmem:[#allocation11 + $0x530] sm:$0xf0]  ;;  %v5185_v32 = vld [vmem:[#allocation11 + $0x3b4] sm:$0xf0] }
 0x1b1   :  { %2531 = vmatpush.bf16.msra.mxu2 %v3737_v45  ;;  %2544 = vmatpush.bf16.msra.mxu3 %v3993_v46  ;;  %v4477_v45 = vor.u32 %v5252_v33, %v4474_v34  ;;  %v4733_v46 = vor.u32 %v5316_v35, %v4730_v36  ;;  %v5220_v23 = vld [vmem:[#allocation11 + $0x4d4] sm:$0xf] }
 0x1b2   :  { %2553 = vmatpush.bf16.msrb.mxu0 %v4377_v40  ;;  %2566 = vmatpush.bf16.msrb.mxu1 %v4633_v47  ;;  %v5148_v40 = vld [vmem:[#allocation11 + $0x294] sm:$0xf] }
 0x1b3   :  { %v4058_v47 = vld [vmem:[#allocation11 + $0x2b0] sm:$0xf0] }
 0x1b4   :  { %2532 = vmatmul.bf16.vlgmr.msra.gmra.mxu2 %v5745_v7  ;;  %2545 = vmatmul.bf16.vlgmr.msra.gmra.mxu3 %v5747_v8  ;;  %v4061_v54 = vor.u32 %v5148_v40, %v4058_v47  ;;  %v4346_v24 = vld [vmem:[#allocation11 + $0x4f0] sm:$0xf0] }
 0x1b5   :  { %2576 = vmatpush.bf16.msrb.mxu2 %v3965_v49  ;;  %2589 = vmatpush.bf16.msrb.mxu3 %v4221_v50  ;;  %v5308_v49 = vld [vmem:[#allocation11 + $0x794] sm:$0xf]  ;;  %v4349_v33 = vor.u32 %v5220_v23, %v4346_v24  ;;  %v4064_v23 = vld [vmem:[#allocation11 + $0x298] sm:$0xf] }
 0x1b6   :  { %2554 = vmatpush.bf16.msrb.mxu0 %v4345_v59  ;;  %2567 = vmatpush.bf16.msrb.mxu1 %v4601_v60  ;;  %v4698_v50 = vld [vmem:[#allocation11 + $0x7b0] sm:$0xf0]  ;;  %v5153_v24 = vld [vmem:[#allocation11 + $0x2b4] sm:$0xf0] }
 0x1b7   :  { %v4701_v58 = vor.u32 %v5308_v49, %v4698_v50  ;;  %v5140_v59 = vld [vmem:[#allocation11 + $0x254] sm:$0xf]  ;;  %v3905_v49 = vor.u32 %v5113_v44, %v3904_v43  ;;  %v4672_v43 = vld [vmem:[#allocation11 + $0x758] sm:$0xf] }
 0x1b8   :  { %v4026_v60 = vld [vmem:[#allocation11 + $0x270] sm:$0xf0]  ;;  %v5305_v44 = vld [vmem:[#allocation11 + $0x774] sm:$0xf0] }
 0x1b9   :  { %2577 = vmatpush.bf16.msrb.mxu2 %v3933_v63  ;;  %2590 = vmatpush.bf16.msrb.mxu3 %v4189_v0  ;;  %v5300_v63 = vld [vmem:[#allocation11 + $0x754] sm:$0xf]  ;;  %v4029_v2 = vor.u32 %v5140_v59, %v4026_v60 }
 0x1ba   :  { %2555 = vmatpush.bf16.msrb.mxu0 %v4313_v9  ;;  %2568 = vmatpush.bf16.msrb.mxu1 %v4569_v10  ;;  %v4666_v0 = vld [vmem:[#allocation11 + $0x770] sm:$0xf0] }
 0x1bb   :  { %v4669_v9 = vor.u32 %v5300_v63, %v4666_v0  ;;  %v3994_v10 = vld [vmem:[#allocation11 + $0x230] sm:$0xf0]  ;;  %v3873_v0 = vor.u32 %v5105_v56, %v3872_v55  ;;  %v4384_v55 = vld [vmem:[#allocation11 + $0x518] sm:$0xf] }
 0x1bc   :  { %v3997_v20 = vor.u32 %v5132_v5, %v3994_v10  ;;  %v4602_v28 = vld [vmem:[#allocation11 + $0x6f0] sm:$0xf0]  ;;  %v5161_v10 = vld [vmem:[#allocation11 + $0x2f4] sm:$0xf0] }
 0x1bd   :  { %2578 = vmatpush.bf16.msrb.mxu2 %v3901_v13  ;;  %2591 = vmatpush.bf16.msrb.mxu3 %v4157_v14  ;;  %v5292_v13 = vld [vmem:[#allocation11 + $0x714] sm:$0xf]  ;;  %v5233_v56 = vld [vmem:[#allocation11 + $0x534] sm:$0xf0] }
 0x1be   :  { %2556 = vmatpush.bf16.msrb.mxu0 %v4281_v21  ;;  %2569 = vmatpush.bf16.msrb.mxu1 %v4537_v22  ;;  %v4634_v14 = vld [vmem:[#allocation11 + $0x730] sm:$0xf0]  ;;  %v4381_v21 = vor.u32 %v5228_v11, %v4378_v12  ;;  %v4480_v11 = vld [vmem:[#allocation11 + $0x5d8] sm:$0xf] }
 0x1bf   :  { %v4637_v22 = vor.u32 %v5292_v13, %v4634_v14  ;;  %v5212_v35 = vld [vmem:[#allocation11 + $0x494] sm:$0xf]  ;;  %v5257_v12 = vld [vmem:[#allocation11 + $0x5f4] sm:$0xf0] }
 0x1c0   :  { %v4314_v36 = vld [vmem:[#allocation11 + $0x4b0] sm:$0xf0]  ;;  %v4736_v13 = vld [vmem:[#allocation11 + $0x7d8] sm:$0xf] }
 0x1c1   :  { %2579 = vmatpush.bf16.msrb.mxu2 %v3869_v26  ;;  %2592 = vmatpush.bf16.msrb.mxu3 %v4125_v27  ;;  %v4225_v26 = vor.u32 %v5193_v18, %v4224_v17  ;;  %v5284_v27 = vld [vmem:[#allocation11 + $0x6d4] sm:$0xf]  ;;  %v4317_v40 = vor.u32 %v5212_v35, %v4314_v36  ;;  %v5321_v14 = vld [vmem:[#allocation11 + $0x7f4] sm:$0xf0]  ;;  %v3841_v17 = vor.u32 %v5097_v4, %v3840_v3 }
 0x1c2   :  { %2557 = vmatpush.bf16.msrb.mxu0 %v4249_v37  ;;  %2570 = vmatpush.bf16.msrb.mxu1 %v4505_v38  ;;  %v4605_v34 = vor.u32 %v5284_v27, %v4602_v28  ;;  %v3937_v37 = vor.u32 %v5121_v30, %v3936_v29  ;;  %v4193_v38 = vor.u32 %v5185_v32, %v4192_v31  ;;  %v5204_v41 = vld [vmem:[#allocation11 + $0x454] sm:$0xf]  ;;  %v4704_v27 = vld [vmem:[#allocation11 + $0x798] sm:$0xf] }
 0x1c3   :  { %v4282_v48 = vld [vmem:[#allocation11 + $0x470] sm:$0xf0]  ;;  %v5313_v28 = vld [vmem:[#allocation11 + $0x7b4] sm:$0xf0]  ;;  %v4065_v30 = vor.u32 %v5153_v24, %v4064_v23 }
 0x1c4   :  { %v4285_v59 = vor.u32 %v5204_v41, %v4282_v48  ;;  %v5196_v61 = vld [vmem:[#allocation11 + $0x414] sm:$0xf]  ;;  %v3776_v31 = vld [vmem:[#allocation11 + $0x58] sm:$0xf] }
 0x1c5   :  { %2580 = vmatpush.bf16.msrb.mxu2 %v3837_v39  ;;  %2593 = vmatpush.bf16.msrb.mxu3 %v4093_v42  ;;  %v5276_v39 = vld [vmem:[#allocation11 + $0x694] sm:$0xf]  ;;  %v5081_v32 = vld [vmem:[#allocation11 + $0x74] sm:$0xf0] }
 0x1c6   :  { %2602 = vmatpush.bf16.msra.mxu0 %v4477_v45  ;;  %2615 = vmatpush.bf16.msra.mxu1 %v4733_v46  ;;  %v4570_v42 = vld [vmem:[#allocation11 + $0x6b0] sm:$0xf0]  ;;  %v4160_v45 = vld [vmem:[#allocation11 + $0x358] sm:$0xf] }
 0x1c7   :  { %2558 = vmatmul.bf16.vlgmr.msrb.gmra.mxu0 %v5751_v51  ;;  %2571 = vmatmul.bf16.vlgmr.msrb.gmra.mxu1 %v5753_v52  ;;  %v5177_v46 = vld [vmem:[#allocation11 + $0x374] sm:$0xf0]  ;;  %v4573_v47 = vor.u32 %v5276_v39, %v4570_v42  ;;  %v4250_v62 = vld [vmem:[#allocation11 + $0x430] sm:$0xf0] }
 0x1c8   :  { %v4161_v50 = vor.u32 %v5177_v46, %v4160_v45  ;;  %v5260_v63 = vld [vmem:[#allocation11 + $0x614] sm:$0xf]  ;;  %v4253_v15 = vor.u32 %v5196_v61, %v4250_v62  ;;  %v4416_v39 = vld [vmem:[#allocation11 + $0x558] sm:$0xf]  ;;  %v5189_v61 = vld [vmem:[#allocation11 + $0x3dc] sm:$0xf] }
 0x1c9   :  { %2581 = vmatpush.bf16.msrb.mxu2 %v3805_v53  ;;  %2594 = vmatpush.bf16.msrb.mxu3 %v4061_v54  ;;  %v5268_v53 = vld [vmem:[#allocation11 + $0x654] sm:$0xf]  ;;  %v5241_v42 = vld [vmem:[#allocation11 + $0x574] sm:$0xf0]  ;;  %v4226_v62 = vld [vmem:[#allocation11 + $0x3f8] sm:$0xf0] }
 0x1ca   :  { %2603 = vmatpush.bf16.msra.mxu0 %v4445_v57  ;;  %2616 = vmatpush.bf16.msra.mxu1 %v4701_v58  ;;  %v4538_v54 = vld [vmem:[#allocation11 + $0x670] sm:$0xf0]  ;;  %v4128_v57 = vld [vmem:[#allocation11 + $0x318] sm:$0xf] }
 0x1cb   :  { %v5169_v58 = vld [vmem:[#allocation11 + $0x334] sm:$0xf0]  ;;  %v4541_v60 = vor.u32 %v5268_v53, %v4538_v54  ;;  %v4673_v53 = vor.u32 %v5305_v44, %v4672_v43 }
 0x1cc   :  { %v3744_v41 = vld [vmem:[#allocation11 + $0x18] sm:$0xf] }
 0x1cd   :  { %2582 = vmatpush.bf16.msrb.mxu2 %v3773_v1  ;;  %2595 = vmatpush.bf16.msrb.mxu3 %v4029_v2  ;;  %v4129_v1 = vor.u32 %v5169_v58, %v4128_v57  ;;  %v4506_v2 = vld [vmem:[#allocation11 + $0x630] sm:$0xf0]  ;;  %v5073_v48 = vld [vmem:[#allocation11 + $0x34] sm:$0xf0] }
 0x1ce   :  { %2604 = vmatpush.bf16.msra.mxu0 %v4413_v6  ;;  %2617 = vmatpush.bf16.msra.mxu1 %v4669_v9  ;;  %v4096_v9 = vld [vmem:[#allocation11 + $0x2d8] sm:$0xf]  ;;  %v4509_v16 = vor.u32 %v5260_v63, %v4506_v2  ;;  %v3745_v63 = vor.u32 %v5073_v48, %v3744_v41  ;;  %v5165_v41 = vld [vmem:[#allocation11 + $0x31c] sm:$0xf] }
 0x1cf   :  { %v4097_v18 = vor.u32 %v5161_v10, %v4096_v9  ;;  %v5137_v54 = vld [vmem:[#allocation11 + $0x234] sm:$0xf0]  ;;  %v4229_v10 = vor.u32 %v5189_v61, %v4226_v62  ;;  %v4130_v48 = vld [vmem:[#allocation11 + $0x338] sm:$0xf0] }
 0x1d0   :  { %v4640_v57 = vld [vmem:[#allocation11 + $0x718] sm:$0xf]  ;;  %v5093_v61 = vld [vmem:[#allocation11 + $0xdc] sm:$0xf] }
 0x1d1   :  { %2583 = vmatpush.bf16.msrb.mxu2 %v3741_v19  ;;  %2596 = vmatpush.bf16.msrb.mxu3 %v3997_v20  ;;  %v3808_v19 = vld [vmem:[#allocation11 + $0x98] sm:$0xf]  ;;  %v3842_v62 = vld [vmem:[#allocation11 + $0xf8] sm:$0xf0] }
 0x1d2   :  { %2605 = vmatpush.bf16.msra.mxu0 %v4381_v21  ;;  %2618 = vmatpush.bf16.msra.mxu1 %v4637_v22  ;;  %v5089_v20 = vld [vmem:[#allocation11 + $0xb4] sm:$0xf0]  ;;  %v4481_v21 = vor.u32 %v5257_v12, %v4480_v11  ;;  %v4737_v22 = vor.u32 %v5321_v14, %v4736_v13 }
 0x1d3   :  { %v3809_v29 = vor.u32 %v5089_v20, %v3808_v19  ;;  %v5297_v58 = vld [vmem:[#allocation11 + $0x734] sm:$0xf0]  ;;  %v5181_v19 = vld [vmem:[#allocation11 + $0x39c] sm:$0xf] }
 0x1d4   :  { %2584 = vmatmul.bf16.vlgmr.msrb.gmra.mxu2 %v5745_v7  ;;  %2597 = vmatmul.bf16.vlgmr.msrb.gmra.mxu3 %v5747_v8  ;;  %v4641_v2 = vor.u32 %v5297_v58, %v4640_v57  ;;  %v4352_v3 = vld [vmem:[#allocation11 + $0x4d8] sm:$0xf]  ;;  %v4194_v20 = vld [vmem:[#allocation11 + $0x3b8] sm:$0xf0] }
 0x1d5   :  { %2628 = vmatpush.bf16.msra.mxu2 %v3969_v25  ;;  %2641 = vmatpush.bf16.msra.mxu3 %v4225_v26  ;;  %v4448_v25 = vld [vmem:[#allocation11 + $0x598] sm:$0xf] }
 0x1d6   :  { %2606 = vmatpush.bf16.msra.mxu0 %v4349_v33  ;;  %2619 = vmatpush.bf16.msra.mxu1 %v4605_v34  ;;  %v5775_v5 = vpop.f32.mrf.mxu2  ;;  %v5777_v6 = vpop.f32.mrf.mxu3  ;;  %v5249_v26 = vld [vmem:[#allocation11 + $0x5b4] sm:$0xf0]  ;;  %v4705_v34 = vor.u32 %v5313_v28, %v4704_v27 }
 0x1d7   :  { %v4449_v33 = vor.u32 %v5249_v26, %v4448_v25  ;;  %v5225_v4 = vld [vmem:[#allocation11 + $0x4f4] sm:$0xf0]  ;;  %v4197_v26 = vor.u32 %v5181_v19, %v4194_v20 }
 0x1d8   :  { %v4608_v13 = vld [vmem:[#allocation11 + $0x6d8] sm:$0xf] }
 0x1d9   :  { %2629 = vmatpush.bf16.msra.mxu2 %v3937_v37  ;;  %2642 = vmatpush.bf16.msra.mxu3 %v4193_v38  ;;  %v4032_v37 = vld [vmem:[#allocation11 + $0x258] sm:$0xf] }
 0x1da   :  { %2607 = vmatpush.bf16.msra.mxu0 %v4317_v40  ;;  %2620 = vmatpush.bf16.msra.mxu1 %v4573_v47  ;;  %v5145_v38 = vld [vmem:[#allocation11 + $0x274] sm:$0xf0]  ;;  %v3777_v40 = vor.u32 %v5081_v32, %v3776_v31  ;;  %v5173_v31 = vld [vmem:[#allocation11 + $0x35c] sm:$0xf] }
 0x1db   :  { %v4033_v47 = vor.u32 %v5145_v38, %v4032_v37  ;;  %v5289_v14 = vld [vmem:[#allocation11 + $0x6f4] sm:$0xf0]  ;;  %v4162_v32 = vld [vmem:[#allocation11 + $0x378] sm:$0xf0] }
 0x1dc   :  { %v4320_v23 = vld [vmem:[#allocation11 + $0x498] sm:$0xf]  ;;  %v4165_v38 = vor.u32 %v5173_v31, %v4162_v32 }
 0x1dd   :  { %2630 = vmatpush.bf16.msra.mxu2 %v3905_v49  ;;  %2643 = vmatpush.bf16.msra.mxu3 %v4161_v50  ;;  %v4000_v49 = vld [vmem:[#allocation11 + $0x218] sm:$0xf]  ;;  %v4417_v50 = vor.u32 %v5241_v42, %v4416_v39 }
 0x1de   :  { %2608 = vmatpush.bf16.msra.mxu0 %v4285_v59  ;;  %2621 = vmatpush.bf16.msra.mxu1 %v4541_v60  ;;  %v2327_v35 = vpop.f32.mrf.mxu2  ;;  %v2340_v36 = vpop.f32.mrf.mxu3  ;;  %v5125_v59 = vld [vmem:[#allocation11 + $0x1dc] sm:$0xf]  ;;  %v5217_v24 = vld [vmem:[#allocation11 + $0x4b4] sm:$0xf0] }
 0x1df   :  { %v3970_v60 = vld [vmem:[#allocation11 + $0x1f8] sm:$0xf0]  ;;  %v4576_v27 = vld [vmem:[#allocation11 + $0x698] sm:$0xf] }
 0x1e0   :  { %v5781_v45 = vpop.f32.mrf.mxu0  ;;  %v5783_v46 = vpop.f32.mrf.mxu1  ;;  %v3973_v9 = vor.u32 %v5125_v59, %v3970_v60  ;;  %v5281_v28 = vld [vmem:[#allocation11 + $0x6b4] sm:$0xf0]  ;;  %v4133_v59 = vor.u32 %v5165_v41, %v4130_v48  ;;  %v5069_v48 = vld [vmem:[#allocation11 + $0x1c] sm:$0xf] }
 0x1e1   :  { %2631 = vmatpush.bf16.msra.mxu2 %v3873_v0  ;;  %2644 = vmatpush.bf16.msra.mxu3 %v4129_v1  ;;  %v4001_v0 = vor.u32 %v5137_v54, %v4000_v49  ;;  %v4385_v1 = vor.u32 %v5233_v56, %v4384_v55  ;;  %v4288_v35 = vld [vmem:[#allocation11 + $0x458] sm:$0xf] }
 0x1e2   :  { %2609 = vmatpush.bf16.msra.mxu0 %v4253_v15  ;;  %2622 = vmatpush.bf16.msra.mxu1 %v4509_v16  ;;  %v5117_v15 = vld [vmem:[#allocation11 + $0x19c] sm:$0xf]  ;;  %v5209_v36 = vld [vmem:[#allocation11 + $0x474] sm:$0xf0] }
 0x1e3   :  { %v4544_v43 = vld [vmem:[#allocation11 + $0x658] sm:$0xf] }
 0x1e4   :  { %v5273_v44 = vld [vmem:[#allocation11 + $0x674] sm:$0xf0] }
 0x1e5   :  { %2632 = vmatpush.bf16.msra.mxu2 %v3841_v17  ;;  %2645 = vmatpush.bf16.msra.mxu3 %v4097_v18  ;;  %v3938_v18 = vld [vmem:[#allocation11 + $0x1b8] sm:$0xf0]  ;;  %v4545_v54 = vor.u32 %v5273_v44, %v4544_v43  ;;  %v4256_v55 = vld [vmem:[#allocation11 + $0x418] sm:$0xf] }
 0x1e6   :  { %2654 = vmatpush.bf16.msrb.mxu0 %v4481_v21  ;;  %2667 = vmatpush.bf16.msrb.mxu1 %v4737_v22  ;;  %v4353_v21 = vor.u32 %v5225_v4, %v4352_v3  ;;  %v4609_v22 = vor.u32 %v5289_v14, %v4608_v13  ;;  %v3941_v25 = vor.u32 %v5117_v15, %v3938_v18  ;;  %v5201_v56 = vld [vmem:[#allocation11 + $0x434] sm:$0xf0]  ;;  %v5317_v3 = vld [vmem:[#allocation11 + $0x7dc] sm:$0xf] }
 0x1e7   :  { %2610 = vmatmul.bf16.vlgmr.msra.gmra.mxu0 %v5751_v51  ;;  %2623 = vmatmul.bf16.vlgmr.msra.gmra.mxu1 %v5753_v52  ;;  %v5785_v11 = vpop.f32.mrf.mxu2  ;;  %v5787_v12 = vpop.f32.mrf.mxu3  ;;  %v4512_v57 = vld [vmem:[#allocation11 + $0x618] sm:$0xf]  ;;  %v4738_v4 = vld [vmem:[#allocation11 + $0x7f8] sm:$0xf0]  ;;  %v3845_v13 = vor.u32 %v5093_v61, %v3842_v62 }
 0x1e8   :  { %v2353_v16 = vpop.f32.mrf.mxu0  ;;  %v2366_v17 = vpop.f32.mrf.mxu1  ;;  %v5265_v60 = vld [vmem:[#allocation11 + $0x634] sm:$0xf0]  ;;  %v5085_v15 = vld [vmem:[#allocation11 + $0x9c] sm:$0xf]  ;;  %v4741_v18 = vor.u32 %v5317_v3, %v4738_v4 }
 0x1e9   :  { %2633 = vmatpush.bf16.msra.mxu2 %v3809_v29  ;;  %2646 = vmatpush.bf16.msra.mxu3 %v4065_v30  ;;  %v5109_v29 = vld [vmem:[#allocation11 + $0x15c] sm:$0xf] }
 0x1ea   :  { %2655 = vmatpush.bf16.msrb.mxu0 %v4449_v33  ;;  %2668 = vmatpush.bf16.msrb.mxu1 %v4705_v34  ;;  %v3906_v30 = vld [vmem:[#allocation11 + $0x178] sm:$0xf0]  ;;  %v4321_v33 = vor.u32 %v5217_v24, %v4320_v23  ;;  %v4577_v34 = vor.u32 %v5281_v28, %v4576_v27 }
 0x1eb   :  { %v3909_v37 = vor.u32 %v5109_v29, %v3906_v30  ;;  %v3810_v16 = vld [vmem:[#allocation11 + $0xb8] sm:$0xf0]  ;;  %v5799_v29 = vld [vmem:[#allocation13] sm:$0xff] }
 0x1ec   :  { %v5245_v23 = vld [vmem:[#allocation11 + $0x59c] sm:$0xf]  ;;  %v1007_v30 = vperm.slane %v5799_v29, 1  ;;  %v3813_v31 = vor.u32 %v5085_v15, %v3810_v16  ;;  %v5337_v15 = vld [vmem:[#allocation14 + $0x78] sm:$0xff] }
 0x1ed   :  { %2634 = vmatpush.bf16.msra.mxu2 %v3777_v40  ;;  %2647 = vmatpush.bf16.msra.mxu3 %v4033_v47  ;;  %v5101_v40 = vld [vmem:[#allocation11 + $0x11c] sm:$0xf] }
 0x1ee   :  { %2656 = vmatpush.bf16.msrb.mxu0 %v4417_v50  ;;  %2669 = vmatpush.bf16.msrb.mxu1 %v4673_v53  ;;  %v3874_v47 = vld [vmem:[#allocation11 + $0x138] sm:$0xf0]  ;;  %v4289_v53 = vor.u32 %v5209_v36, %v4288_v35  ;;  %v2378_v61 = vadd.f32 %v5785_v11, %v1007_v30 }
 0x1ef   :  { %v2379_v39 = vpop.f32.mrf.mxu2  ;;  %v2392_v42 = vpop.f32.mrf.mxu3  ;;  %v3877_v58 = vor.u32 %v5101_v40, %v3874_v47  ;;  %v5309_v27 = vld [vmem:[#allocation11 + $0x79c] sm:$0xf]  ;;  %v1006_v40 = vperm.slane %v5799_v29, 0 }
 0x1f0   :  { %v5791_v49 = vpop.f32.mrf.mxu0  ;;  %v5793_v50 = vpop.f32.mrf.mxu1  ;;  %v4706_v28 = vld [vmem:[#allocation11 + $0x7b8] sm:$0xf0]  ;;  %v2391_v16 = vadd.f32 %v5787_v12, %v2378_v61  ;;  %v5345_v61 = vld [vmem:[#allocation14 + $0xb8] sm:$0xff] }
 0x1f1   :  { %2635 = vmatpush.bf16.msra.mxu2 %v3745_v63  ;;  %2648 = vmatpush.bf16.msra.mxu3 %v4001_v0  ;;  %v5157_v63 = vld [vmem:[#allocation11 + $0x2dc] sm:$0xf]  ;;  %v4709_v36 = vor.u32 %v5309_v27, %v4706_v28  ;;  %v2326_v3 = vadd.f32 %v5775_v5, %v1006_v40 }
 0x1f2   :  { %2657 = vmatpush.bf16.msrb.mxu0 %v4385_v1  ;;  %2670 = vmatpush.bf16.msrb.mxu1 %v4641_v2  ;;  %v4098_v0 = vld [vmem:[#allocation11 + $0x2f8] sm:$0xf0]  ;;  %v2404_v5 = vadd.f32 %v5791_v49, %v2391_v16 }
 0x1f3   :  { %v5253_v1 = vld [vmem:[#allocation11 + $0x5dc] sm:$0xf]  ;;  %v4101_v14 = vor.u32 %v5157_v63, %v4098_v0 }
 0x1f4   :  { %2636 = vmatmul.bf16.vlgmr.msra.gmra.mxu2 %v5745_v7  ;;  %2649 = vmatmul.bf16.vlgmr.msra.gmra.mxu3 %v5747_v8  ;;  %v4482_v2 = vld [vmem:[#allocation11 + $0x5f8] sm:$0xf0] }
 0x1f5   :  { %2680 = vmatpush.bf16.msrb.mxu2 %v3973_v9  ;;  %2693 = vmatpush.bf16.msrb.mxu3 %v4229_v10  ;;  %v4257_v9 = vor.u32 %v5201_v56, %v4256_v55  ;;  %v4513_v10 = vor.u32 %v5265_v60, %v4512_v57  ;;  %v4485_v17 = vor.u32 %v5253_v1, %v4482_v2  ;;  %v5237_v39 = vld [vmem:[#allocation11 + $0x55c] sm:$0xf] }
 0x1f6   :  { %2658 = vmatpush.bf16.msrb.mxu0 %v4353_v21  ;;  %2671 = vmatpush.bf16.msrb.mxu1 %v4609_v22  ;;  %v5149_v21 = vld [vmem:[#allocation11 + $0x29c] sm:$0xf] }
 0x1f7   :  { %v5795_v19 = vpop.f32.mrf.mxu2  ;;  %v5797_v20 = vpop.f32.mrf.mxu3  ;;  %v4066_v22 = vld [vmem:[#allocation11 + $0x2b8] sm:$0xf0] }
 0x1f8   :  { %v2405_v24 = vpop.f32.mrf.mxu0  ;;  %v4069_v32 = vor.u32 %v5149_v21, %v4066_v22  ;;  %v4418_v42 = vld [vmem:[#allocation11 + $0x578] sm:$0xf0]  ;;  %v2339_v22 = vadd.f32 %v5777_v6, %v2326_v3  ;;  %v1009_v3 = vperm.slane %v5799_v29, 3 }
 0x1f9   :  { %2681 = vmatpush.bf16.msrb.mxu2 %v3941_v25  ;;  %2694 = vmatpush.bf16.msrb.mxu3 %v4197_v26  ;;  %v2418_v25 = vpop.f32.mrf.mxu1  ;;  %v4450_v26 = vld [vmem:[#allocation11 + $0x5b8] sm:$0xf0] }
 0x1fa   :  { %2659 = vmatpush.bf16.msrb.mxu0 %v4321_v33  ;;  %2672 = vmatpush.bf16.msrb.mxu1 %v4577_v34  ;;  %v5077_v33 = vld [vmem:[#allocation11 + $0x5c] sm:$0xf]  ;;  %v4453_v35 = vor.u32 %v5245_v23, %v4450_v26  ;;  %v2352_v28 = vadd.f32 %v5781_v45, %v2339_v22 }
 0x1fb   :  { %v3778_v34 = vld [vmem:[#allocation11 + $0x78] sm:$0xf0] }
 0x1fc   :  { %v5301_v43 = vld [vmem:[#allocation11 + $0x75c] sm:$0xf]  ;;  %v3781_v47 = vor.u32 %v5077_v33, %v3778_v34 }
 0x1fd   :  { %2682 = vmatpush.bf16.msrb.mxu2 %v3909_v37  ;;  %2695 = vmatpush.bf16.msrb.mxu3 %v4165_v38  ;;  %v5141_v37 = vld [vmem:[#allocation11 + $0x25c] sm:$0xf] }
 0x1fe   :  { %2660 = vmatpush.bf16.msrb.mxu0 %v4289_v53  ;;  %2673 = vmatpush.bf16.msrb.mxu1 %v4545_v54  ;;  %v4034_v38 = vld [vmem:[#allocation11 + $0x278] sm:$0xf0]  ;;  %v4421_v54 = vor.u32 %v5237_v39, %v4418_v42 }
 0x1ff   :  { %v4674_v44 = vld [vmem:[#allocation11 + $0x778] sm:$0xf0]  ;;  %v4037_v41 = vor.u32 %v5141_v37, %v4034_v38  ;;  %v2431_v56 = vpop.f32.mrf.mxu2  ;;  %v2444_v57 = vpop.f32.mrf.mxu3  ;;  %v2365_v37 = vadd.f32 %v5783_v46, %v2352_v28  ;;  %v5322_v28 = vld [vmem:[#allocation14] sm:$0xff] }
 0x200   :  { %v3746_v53 = vld [vmem:[#allocation11 + $0x38] sm:$0xf0]  ;;  %v4677_v55 = vor.u32 %v5301_v43, %v4674_v44  ;;  %v5334_v44 = vld [vmem:[#allocation14 + $0x60] sm:$0xff]  ;;  %v1008_v56 = vperm.slane %v5799_v29, 2  ;;  %v5325_v57 = vld [vmem:[#allocation14 + $0x18] sm:$0xff] }
 0x201   :  { %2683 = vmatpush.bf16.msrb.mxu2 %v3877_v58  ;;  %2696 = vmatpush.bf16.msrb.mxu3 %v4133_v59  ;;  %v5133_v58 = vld [vmem:[#allocation11 + $0x21c] sm:$0xf]  ;;  %v3749_v4 = vor.u32 %v5069_v48, %v3746_v53 }
 0x202   :  { %2661 = vmatpush.bf16.msrb.mxu0 %v4257_v9  ;;  %2674 = vmatpush.bf16.msrb.mxu1 %v4513_v10  ;;  %v4002_v59 = vld [vmem:[#allocation11 + $0x238] sm:$0xf0] }
 0x203   :  { %v5229_v60 = vld [vmem:[#allocation11 + $0x51c] sm:$0xf]  ;;  %v4005_v9 = vor.u32 %v5133_v58, %v4002_v59  ;;  %v5333_v58 = vld [vmem:[#allocation14 + $0x58] sm:$0xff] }
 0x204   :  { %v4386_v62 = vld [vmem:[#allocation11 + $0x538] sm:$0xf0]  ;;  %v5806_v1 = vpop.f32.mrf.mxu0  ;;  %v5808_v2 = vpop.f32.mrf.mxu1 }
 0x205   :  { %2684 = vmatpush.bf16.msrb.mxu2 %v3845_v13  ;;  %2697 = vmatpush.bf16.msrb.mxu3 %v4101_v14  ;;  %v5293_v63 = vld [vmem:[#allocation11 + $0x71c] sm:$0xf]  ;;  %v4389_v10 = vor.u32 %v5229_v60, %v4386_v62  ;;  %v5329_v14 = vld [vmem:[#allocation14 + $0x38] sm:$0xff] }
 0x206   :  { %2706 = vmatpush.bf16.msra.mxu0 %v4485_v17  ;;  %2719 = vmatpush.bf16.msra.mxu1 %v4741_v18  ;;  %v4642_v0 = vld [vmem:[#allocation11 + $0x738] sm:$0xf0]  ;;  %v5353_v62 = vld [vmem:[#allocation14 + $0xf8] sm:$0xff] }
 0x207   :  { %2662 = vmatmul.bf16.vlgmr.msrb.gmra.mxu0 %v5751_v51  ;;  %2675 = vmatmul.bf16.vlgmr.msrb.gmra.mxu1 %v5753_v52  ;;  %v4645_v13 = vor.u32 %v5293_v63, %v4642_v0  ;;  %v5221_v11 = vld [vmem:[#allocation11 + $0x4dc] sm:$0xf] }
 0x208   :  { %v4354_v17 = vld [vmem:[#allocation11 + $0x4f8] sm:$0xf0] }
 0x209   :  { %2685 = vmatpush.bf16.msrb.mxu2 %v3813_v31  ;;  %2698 = vmatpush.bf16.msrb.mxu3 %v4069_v32  ;;  %v5285_v18 = vld [vmem:[#allocation11 + $0x6dc] sm:$0xf]  ;;  %v4357_v23 = vor.u32 %v5221_v11, %v4354_v17  ;;  %v2417_v32 = vadd.f32 %v5793_v50, %v2404_v5  ;;  %v5326_v50 = vld [vmem:[#allocation14 + $0x20] sm:$0xff] }
 0x20a   :  { %2707 = vmatpush.bf16.msra.mxu0 %v4453_v35  ;;  %2720 = vmatpush.bf16.msra.mxu1 %v4709_v36  ;;  %v4610_v21 = vld [vmem:[#allocation11 + $0x6f8] sm:$0xf0]  ;;  %v5327_v35 = vld [vmem:[#allocation14 + $0x28] sm:$0xff] }
 0x20b   :  { %v4613_v24 = vor.u32 %v5285_v18, %v4610_v21  ;;  %v5328_v25 = vld [vmem:[#allocation14 + $0x30] sm:$0xff]  ;;  %v5335_v36 = vld [vmem:[#allocation14 + $0x68] sm:$0xff]  ;;  %v2732_v42 = vpack.c.bf16 %v2417_v32, %v2365_v37  ;;  %v5361_v37 = vld [vmem:[#allocation14 + $0x138] sm:$0xff] }
 0x20c   :  { %v5336_v26 = vld [vmem:[#allocation14 + $0x70] sm:$0xff]  ;;  %v2457_v6 = vpop.f32.mrf.mxu0  ;;  %v2470_v49 = vpop.f32.mrf.mxu1  ;;  %v5323_v18 = vld [vmem:[#allocation14 + $0x8] sm:$0xff] }
 0x20d   :  { %2686 = vmatpush.bf16.msrb.mxu2 %v3781_v47  ;;  %2699 = vmatpush.bf16.msrb.mxu3 %v4037_v41  ;;  %v5213_v27 = vld [vmem:[#allocation11 + $0x49c] sm:$0xf]  ;;  %v2736_v53 = vunpack.c.l.bf16 %v2732_v42  ;;  %v2737_v46 = vunpack.c.h.bf16 %v2732_v42  ;;  %v5331_v21 = vld [vmem:[#allocation14 + $0x48] sm:$0xff] }
 0x20e   :  { %2708 = vmatpush.bf16.msra.mxu0 %v4421_v54  ;;  %2721 = vmatpush.bf16.msra.mxu1 %v4677_v55  ;;  %v4322_v12 = vld [vmem:[#allocation11 + $0x4b8] sm:$0xf0] }
 0x20f   :  { %v5277_v30 = vld [vmem:[#allocation11 + $0x69c] sm:$0xf]  ;;  %v4325_v33 = vor.u32 %v5213_v27, %v4322_v12  ;;  %v2752_v63 = vmul.f32 0.20019531, %v2736_v53  ;;  %v2753_v0 = vmul.f32 0.20019531, %v2737_v46  ;;  %vm5822_vm10 = vcmp.gt.f32.partialorder %v2736_v53, 0.0  ;;  %v5330_v12 = vld [vmem:[#allocation14 + $0x40] sm:$0xff] }
 0x210   :  { %v4578_v31 = vld [vmem:[#allocation11 + $0x6b8] sm:$0xf0]  ;;  %vm5826_vm11 = vcmp.gt.f32.partialorder %v2737_v46, 0.0  ;;  %v5338_v53 = vld [vmem:[#allocation14 + $0x80] sm:$0xff] }
 0x211   :  { %2687 = vmatpush.bf16.msrb.mxu2 %v3749_v4  ;;  %2700 = vmatpush.bf16.msrb.mxu3 %v4005_v9  ;;  %v4581_v34 = vor.u32 %v5277_v30, %v4578_v31  ;;  %v5205_v45 = vld [vmem:[#allocation11 + $0x45c] sm:$0xf]  ;;  %v2430_v4 = vadd.f32 %v5795_v19, %v1008_v56  ;;  %v2760_v16 = vpack.c.bf16 %v2753_v0, %v2752_v63  ;;  %vm2764_vm12 = vmpackc.low %vm5826_vm11, %vm5822_vm10  ;;  %v5342_v30 = vld [vmem:[#allocation14 + $0xa0] sm:$0xff] }
 0x212   :  { %2709 = vmatpush.bf16.msra.mxu0 %v4389_v10  ;;  %2722 = vmatpush.bf16.msra.mxu1 %v4645_v13  ;;  %v4290_v38 = vld [vmem:[#allocation11 + $0x478] sm:$0xf0]  ;;  %v5350_v31 = vld [vmem:[#allocation14 + $0xe0] sm:$0xff]  ;;  %v5367_v63 = vld [vmem:[#allocation14 + $0x168] sm:$0xff] }
 0x213   :  { %v5269_v39 = vld [vmem:[#allocation11 + $0x65c] sm:$0xf]  ;;  %v2443_v19 = vadd.f32 %v5797_v20, %v2430_v4  ;;  %v5346_v46 = vld [vmem:[#allocation14 + $0xc0] sm:$0xff] }
 0x214   :  { %2688 = vmatmul.bf16.vlgmr.msrb.gmra.mxu2 %v5745_v7  ;;  %2701 = vmatmul.bf16.vlgmr.msrb.gmra.mxu3 %v5747_v8  ;;  %v4546_v7 = vld [vmem:[#allocation11 + $0x678] sm:$0xf0]  ;;  %v4293_v8 = vor.u32 %v5205_v45, %v4290_v38  ;;  %v5349_v45 = vld [vmem:[#allocation14 + $0xd8] sm:$0xff]  ;;  %v5358_v4 = vld [vmem:[#allocation14 + $0x120] sm:$0xff] }
 0x215   :  { %3316 = vmatpush.bf16.msra.mxu2 %v5329_v14  ;;  %3329 = vmatpush.bf16.msra.mxu3 %v5337_v15  ;;  %v4549_v43 = vor.u32 %v5269_v39, %v4546_v7  ;;  %v5197_v40 = vld [vmem:[#allocation11 + $0x41c] sm:$0xf]  ;;  %v5369_v38 = vld [vmem:[#allocation14 + $0x178] sm:$0xff] }
 0x216   :  { %2710 = vmatpush.bf16.msra.mxu0 %v4357_v23  ;;  %2723 = vmatpush.bf16.msra.mxu1 %v4613_v24  ;;  %v4258_v47 = vld [vmem:[#allocation11 + $0x438] sm:$0xf0]  ;;  %v5343_v23 = vld [vmem:[#allocation14 + $0xa8] sm:$0xff]  ;;  %v5365_v15 = vld [vmem:[#allocation14 + $0x158] sm:$0xff] }
 0x217   :  { %v5261_v41 = vld [vmem:[#allocation11 + $0x61c] sm:$0xf]  ;;  %v4261_v54 = vor.u32 %v5197_v40, %v4258_v47  ;;  %v2481_v59 = vpop.f32.mrf.mxu2  ;;  %v2494_v60 = vpop.f32.mrf.mxu3  ;;  %v5351_v24 = vld [vmem:[#allocation14 + $0xe8] sm:$0xff] }
 0x218   :  { %v4514_v48 = vld [vmem:[#allocation11 + $0x638] sm:$0xf0]  ;;  %v2482_v17 = vadd.f32 %v2481_v59, %v1009_v3  ;;  %v5339_v47 = vld [vmem:[#allocation14 + $0x88] sm:$0xff] }
 0x219   :  { %3317 = vmatpush.bf16.msra.mxu2 %v5328_v25  ;;  %3330 = vmatpush.bf16.msra.mxu3 %v5336_v26  ;;  %v4517_v55 = vor.u32 %v5261_v41, %v4514_v48  ;;  %v5324_v9 = vld [vmem:[#allocation14 + $0x10] sm:$0xff]  ;;  %v5347_v41 = vld [vmem:[#allocation14 + $0xc8] sm:$0xff] }
 0x21a   :  { %2711 = vmatpush.bf16.msra.mxu0 %v4325_v33  ;;  %2724 = vmatpush.bf16.msra.mxu1 %v4581_v34  ;;  %v5332_v10 = vld [vmem:[#allocation14 + $0x50] sm:$0xff]  ;;  %v2495_v25 = vadd.f32 %v2494_v60, %v2482_v17 }
 0x21b   :  { %v5344_v13 = vld [vmem:[#allocation14 + $0xb0] sm:$0xff] }
 0x21c   :  { %v5352_v14 = vld [vmem:[#allocation14 + $0xf0] sm:$0xff] }
 0x21d   :  { %3318 = vmatpush.bf16.msra.mxu2 %v5327_v35  ;;  %3331 = vmatpush.bf16.msra.mxu3 %v5335_v36  ;;  %v5368_v59 = vld [vmem:[#allocation14 + $0x170] sm:$0xff] }
 0x21e   :  { %2712 = vmatpush.bf16.msra.mxu0 %v4293_v8  ;;  %2725 = vmatpush.bf16.msra.mxu1 %v4549_v43  ;;  %v5356_v11 = vld [vmem:[#allocation14 + $0x110] sm:$0xff] }
 0x21f   :  { %v2483_v22 = vpop.f32.mrf.mxu2  ;;  %v2496_v5 = vpop.f32.mrf.mxu3 }
 0x220   :  { %v5354_v22 = vld [vmem:[#allocation14 + $0x100] sm:$0xff] }
 0x221   :  { %3319 = vmatpush.bf16.msra.mxu2 %v5326_v50  ;;  %3332 = vmatpush.bf16.msra.mxu3 %v5334_v44  ;;  %v5340_v50 = vld [vmem:[#allocation14 + $0x90] sm:$0xff]  ;;  %v5362_v5 = vld [vmem:[#allocation14 + $0x140] sm:$0xff] }
 0x222   :  { %2713 = vmatpush.bf16.msra.mxu0 %v4261_v54  ;;  %2726 = vmatpush.bf16.msra.mxu1 %v4517_v55  ;;  %v5348_v44 = vld [vmem:[#allocation14 + $0xd0] sm:$0xff] }
 0x224   :  { %v2507_v20 = vpop.f32.mrf.mxu0  ;;  %v2520_v26 = vpop.f32.mrf.mxu1 }
 0x225   :  { %3320 = vmatpush.bf16.msra.mxu2 %v5325_v57  ;;  %3333 = vmatpush.bf16.msra.mxu3 %v5333_v58  ;;  %v2508_v27 = vadd.f32 %v2507_v20, %v2495_v25  ;;  %v5360_v58 = vld [vmem:[#allocation14 + $0x130] sm:$0xff] }
 0x226   :  { %3342 = vmatpush.bf16.msrb.mxu0 %v5345_v61  ;;  %3355 = vmatpush.bf16.msrb.mxu1 %v5353_v62  ;;  %v5359_v62 = vld [vmem:[#allocation14 + $0x128] sm:$0xff] }
 0x227   :  { %2714 = vmatmul.bf16.vlgmr.msra.gmra.mxu0 %v5751_v51  ;;  %2727 = vmatmul.bf16.vlgmr.msra.gmra.mxu1 %v5753_v52  ;;  %v2768_v51 = vsel %vm2764_vm12, %v2732_v42, %v2760_v16  ;;  %v2456_v52 = vadd.f32 %v5806_v1, %v2443_v19  ;;  %v2521_v33 = vadd.f32 %v2520_v26, %v2508_v27  ;;  %v5341_v1 = vld [vmem:[#allocation14 + $0x98] sm:$0xff]  ;;  %v5364_v16 = vld [vmem:[#allocation14 + $0x150] sm:$0xff] }
 0x228   :  { %v2908_v6 = vunpack.c.l.b16 %v2768_v51  ;;  %v2909_v49 = vunpack.c.h.b16 %v2768_v51 }
 0x229   :  { %3321 = vmatpush.bf16.msra.mxu2 %v5324_v9  ;;  %3334 = vmatpush.bf16.msra.mxu3 %v5332_v10  ;;  %v2469_v32 = vadd.f32 %v5808_v2, %v2456_v52  ;;  %v5366_v9 = vld [vmem:[#allocation14 + $0x160] sm:$0xff]  ;;  %v1011_v52 = vperm.slane %v5799_v29, 5 }
 0x22a   :  { %3343 = vmatpush.bf16.msrb.mxu0 %v5344_v13  ;;  %3356 = vmatpush.bf16.msrb.mxu1 %v5352_v14  ;;  %v2916_v35 = vpack.c.b16 %v2908_v6, %v2908_v6  ;;  %v2917_v36 = vpack.c.b16 %v2909_v49, %v2909_v49  ;;  %v5357_v14 = vld [vmem:[#allocation14 + $0x118] sm:$0xff] }
 0x22b   :  { %v2733_v34 = vpack.c.bf16 %v2521_v33, %v2469_v32 }
 0x22c   :  { %v2509_v42 = vpop.f32.mrf.mxu0  ;;  %v2522_v8 = vpop.f32.mrf.mxu1 }
 0x22d   :  { %3322 = vmatpush.bf16.msra.mxu2 %v5323_v18  ;;  %3335 = vmatpush.bf16.msra.mxu3 %v5331_v21  ;;  %v2738_v39 = vunpack.c.l.bf16 %v2733_v34  ;;  %v2739_v7 = vunpack.c.h.bf16 %v2733_v34  ;;  %v5355_v18 = vld [vmem:[#allocation14 + $0x108] sm:$0xff] }
 0x22e   :  { %3344 = vmatpush.bf16.msrb.mxu0 %v5343_v23  ;;  %3357 = vmatpush.bf16.msrb.mxu1 %v5351_v24  ;;  %v5363_v21 = vld [vmem:[#allocation14 + $0x148] sm:$0xff]  ;;  %v1010_v23 = vperm.slane %v5799_v29, 4 }
 0x22f   :  { %v2754_v43 = vmul.f32 0.20019531, %v2738_v39  ;;  %v2755_v2 = vmul.f32 0.20019531, %v2739_v7  ;;  %vm2746_vm13 = vcmp.gt.f32.partialorder %v2738_v39, 0.0  ;;  %vm2747_vm14 = vcmp.gt.f32.partialorder %v2739_v7, 0.0 }
 0x230   :  { %vm2765_vm15 = vmpackc.low %vm2747_vm14, %vm2746_vm13 }
 0x231   :  { %3323 = vmatpush.bf16.msra.mxu2 %v5322_v28  ;;  %3336 = vmatpush.bf16.msra.mxu3 %v5330_v12  ;;  %v2761_v40 = vpack.c.bf16 %v2755_v2, %v2754_v43 }
 0x232   :  { %3345 = vmatpush.bf16.msrb.mxu0 %v5342_v30  ;;  %3358 = vmatpush.bf16.msrb.mxu1 %v5350_v31 }
 0x233   :  { %v2769_v48 = vsel %vm2765_vm15, %v2733_v34, %v2761_v40  ;;  %v5376_v40 = vld [vmem:[#allocation14 + $0x1b0] sm:$0xff] }
 0x234   :  { %3324 = vmatmul.bf16.vlgmr.msra.gmra.mxu2 %v2916_v35  ;;  %3337 = vmatmul.bf16.vlgmr.msra.gmra.mxu3 %v2917_v36  ;;  %v2910_v56 = vunpack.c.l.b16 %v2769_v48  ;;  %v2911_v57 = vunpack.c.h.b16 %v2769_v48  ;;  %v5385_v35 = vld [vmem:[#allocation14 + $0x1f8] sm:$0xff] }
 0x235   :  { %3368 = vmatpush.bf16.msrb.mxu2 %v5361_v37  ;;  %3381 = vmatpush.bf16.msrb.mxu3 %v5369_v38 }
 0x236   :  { %3346 = vmatpush.bf16.msrb.mxu0 %v5341_v1  ;;  %3359 = vmatpush.bf16.msrb.mxu1 %v5349_v45  ;;  %v2918_v60 = vpack.c.b16 %v2910_v56, %v2910_v56  ;;  %v2919_v61 = vpack.c.b16 %v2911_v57, %v2911_v57  ;;  %v5377_v1 = vld [vmem:[#allocation14 + $0x1b8] sm:$0xff] }
 0x237   :  { %v2533_v54 = vpop.f32.mrf.mxu2  ;;  %v2546_v55 = vpop.f32.mrf.mxu3 }
 0x238   :  { %v2534_v25 = vadd.f32 %v2533_v54, %v1010_v23  ;;  %v5374_v54 = vld [vmem:[#allocation14 + $0x1a0] sm:$0xff] }
 0x239   :  { %3369 = vmatpush.bf16.msrb.mxu2 %v5360_v58  ;;  %3382 = vmatpush.bf16.msrb.mxu3 %v5368_v59 }
 0x23a   :  { %3347 = vmatpush.bf16.msrb.mxu0 %v5340_v50  ;;  %3360 = vmatpush.bf16.msrb.mxu1 %v5348_v44  ;;  %v2547_v26 = vadd.f32 %v2546_v55, %v2534_v25  ;;  %v5382_v55 = vld [vmem:[#allocation14 + $0x1e0] sm:$0xff] }
 0x23d   :  { %3370 = vmatpush.bf16.msrb.mxu2 %v5359_v62  ;;  %3383 = vmatpush.bf16.msrb.mxu3 %v5367_v63  ;;  %v5372_v62 = vld [vmem:[#allocation14 + $0x190] sm:$0xff] }
 0x23e   :  { %3348 = vmatpush.bf16.msrb.mxu0 %v5339_v47  ;;  %3361 = vmatpush.bf16.msrb.mxu1 %v5347_v41  ;;  %v5384_v47 = vld [vmem:[#allocation14 + $0x1f0] sm:$0xff] }
 0x23f   :  { %v2535_v0 = vpop.f32.mrf.mxu2  ;;  %v2548_v3 = vpop.f32.mrf.mxu3  ;;  %v5380_v63 = vld [vmem:[#allocation14 + $0x1d0] sm:$0xff] }
 0x241   :  { %3371 = vmatpush.bf16.msrb.mxu2 %v5358_v4  ;;  %3384 = vmatpush.bf16.msrb.mxu3 %v5366_v9  ;;  %v5371_v4 = vld [vmem:[#allocation14 + $0x188] sm:$0xff] }
 0x242   :  { %3349 = vmatpush.bf16.msrb.mxu0 %v5338_v53  ;;  %3362 = vmatpush.bf16.msrb.mxu1 %v5346_v46  ;;  %v5375_v53 = vld [vmem:[#allocation14 + $0x1a8] sm:$0xff] }
 0x243   :  { %v5383_v46 = vld [vmem:[#allocation14 + $0x1e8] sm:$0xff] }
 0x244   :  { %v2559_v10 = vpop.f32.mrf.mxu0  ;;  %v2572_v13 = vpop.f32.mrf.mxu1  ;;  %v5379_v9 = vld [vmem:[#allocation14 + $0x1c8] sm:$0xff] }
 0x245   :  { %3350 = vmatmul.bf16.vlgmr.msrb.gmra.mxu0 %v2918_v60  ;;  %3363 = vmatmul.bf16.vlgmr.msrb.gmra.mxu1 %v2919_v61  ;;  %v2560_v12 = vadd.f32 %v2559_v10, %v2547_v26  ;;  %v5373_v60 = vld [vmem:[#allocation14 + $0x198] sm:$0xff]  ;;  %v5370_v10 = vld [vmem:[#allocation14 + $0x180] sm:$0xff] }
 0x246   :  { %3372 = vmatpush.bf16.msrb.mxu2 %v5357_v14  ;;  %3385 = vmatpush.bf16.msrb.mxu3 %v5365_v15  ;;  %v5381_v61 = vld [vmem:[#allocation14 + $0x1d8] sm:$0xff]  ;;  %v1012_v14 = vperm.slane %v5799_v29, 6 }
 0x247   :  { %v2573_v32 = vadd.f32 %v2572_v13, %v2560_v12  ;;  %3394 = vmatpush.bf16.msra.mxu0 %v5377_v1  ;;  %3407 = vmatpush.bf16.msra.mxu1 %v5385_v35  ;;  %v5378_v13 = vld [vmem:[#allocation14 + $0x1c0] sm:$0xff]  ;;  %v5403_v35 = vld [vmem:[%s5857_s8] ss:$0 sm:$0xff]  ;;  %s5650_s8 = smov [#allocation16]  }
 0x248   :  { %s3428_s28 = sshll.u32 %s5650_s8, 4  ;;  %s3429_s28 = int_to_ptr.vmem [resolvable:$true] %s3428_s28 }
 0x24a   :  { %3373 = vmatpush.bf16.msrb.mxu2 %v5356_v11  ;;  %3386 = vmatpush.bf16.msrb.mxu3 %v5364_v16  ;;  %v1013_v16 = vperm.slane %v5799_v29, 7 }
 0x24b   :  { %3395 = vmatpush.bf16.msra.mxu0 %v5376_v40  ;;  %3408 = vmatpush.bf16.msra.mxu1 %v5384_v47 }
 0x24c   :  { %v2561_v17 = vpop.f32.mrf.mxu0  ;;  %v2574_v19 = vpop.f32.mrf.mxu1 }
 0x24e   :  { %3374 = vmatpush.bf16.msrb.mxu2 %v5355_v18  ;;  %3387 = vmatpush.bf16.msrb.mxu3 %v5363_v21 }
 0x24f   :  { %3396 = vmatpush.bf16.msra.mxu0 %v5375_v53  ;;  %3409 = vmatpush.bf16.msra.mxu1 %v5383_v46 }
 0x252   :  { %3375 = vmatpush.bf16.msrb.mxu2 %v5354_v22  ;;  %3388 = vmatpush.bf16.msrb.mxu3 %v5362_v5 }
 0x253   :  { %3397 = vmatpush.bf16.msra.mxu0 %v5374_v54  ;;  %3410 = vmatpush.bf16.msra.mxu1 %v5382_v55 }
 0x257   :  { %v2585_v24 = vpop.f32.mrf.mxu2  ;;  %v2598_v51 = vpop.f32.mrf.mxu3  ;;  %3398 = vmatpush.bf16.msra.mxu0 %v5373_v60  ;;  %3411 = vmatpush.bf16.msra.mxu1 %v5381_v61 }
 0x258   :  { %v2586_v20 = vadd.f32 %v2585_v24, %v1011_v52 }
 0x25a   :  { %v2599_v30 = vadd.f32 %v2598_v51, %v2586_v20 }
 0x25b   :  { %3399 = vmatpush.bf16.msra.mxu0 %v5372_v62  ;;  %3412 = vmatpush.bf16.msra.mxu1 %v5380_v63 }
 0x25f   :  { %v2587_v27 = vpop.f32.mrf.mxu2  ;;  %v2600_v28 = vpop.f32.mrf.mxu3  ;;  %3400 = vmatpush.bf16.msra.mxu0 %v5371_v4  ;;  %3413 = vmatpush.bf16.msra.mxu1 %v5379_v9 }
 0x263   :  { %3401 = vmatpush.bf16.msra.mxu0 %v5370_v10  ;;  %3414 = vmatpush.bf16.msra.mxu1 %v5378_v13 }
 0x264   :  { %v2611_v31 = vpop.f32.mrf.mxu0  ;;  %v2624_v6 = vpop.f32.mrf.mxu1 }
 0x265   :  { %v2612_v49 = vadd.f32 %v2611_v31, %v2599_v30 }
 0x267   :  { %v2625_v33 = vadd.f32 %v2624_v6, %v2612_v49 }
 0x269   :  { %v2734_v34 = vpack.c.bf16 %v2625_v33, %v2573_v32 }
 0x26b   :  { %v2740_v36 = vunpack.c.l.bf16 %v2734_v34  ;;  %v2741_v45 = vunpack.c.h.bf16 %v2734_v34 }
 0x26c   :  { %v2613_v37 = vpop.f32.mrf.mxu0  ;;  %v2626_v38 = vpop.f32.mrf.mxu1 }
 0x26d   :  { %vm2748_vm0 = vcmp.gt.f32.partialorder %v2740_v36, 0.0  ;;  %vm2749_vm1 = vcmp.gt.f32.partialorder %v2741_v45, 0.0  ;;  %v2756_v39 = vmul.f32 0.20019531, %v2740_v36  ;;  %v2757_v7 = vmul.f32 0.20019531, %v2741_v45 }
 0x26e   :  { %vm2766_vm2 = vmpackc.low %vm2749_vm1, %vm2748_vm0 }
 0x26f   :  { %v2762_v42 = vpack.c.bf16 %v2757_v7, %v2756_v39 }
 0x271   :  { %v2770_v8 = vsel %vm2766_vm2, %v2734_v34, %v2762_v42 }
 0x272   :  { %v2912_v43 = vunpack.c.l.b16 %v2770_v8  ;;  %v2913_v2 = vunpack.c.h.b16 %v2770_v8 }
 0x274   :  { %v2920_v50 = vpack.c.b16 %v2912_v43, %v2912_v43  ;;  %v2921_v44 = vpack.c.b16 %v2913_v2, %v2913_v2 }
 0x276   :  { %3376 = vmatmul.bf16.vlgmr.msrb.gmra.mxu2 %v2920_v50  ;;  %3389 = vmatmul.bf16.vlgmr.msrb.gmra.mxu3 %v2921_v44 }
 0x277   :  { %v2637_v41 = vpop.f32.mrf.mxu2  ;;  %v2650_v48 = vpop.f32.mrf.mxu3 }
 0x278   :  { %v2638_v17 = vadd.f32 %v2637_v41, %v1012_v14 }
 0x27a   :  { %v2651_v18 = vadd.f32 %v2650_v48, %v2638_v17 }
 0x27f   :  { %v2639_v56 = vpop.f32.mrf.mxu2  ;;  %v2652_v57 = vpop.f32.mrf.mxu3 }
 0x284   :  { %v2663_v58 = vpop.f32.mrf.mxu0  ;;  %v2676_v59 = vpop.f32.mrf.mxu1 }
 0x285   :  { %v2664_v5 = vadd.f32 %v2663_v58, %v2651_v18 }
 0x287   :  { %v2677_v25 = vadd.f32 %v2676_v59, %v2664_v5 }
 0x28c   :  { %v2665_v0 = vpop.f32.mrf.mxu0  ;;  %v2678_v3 = vpop.f32.mrf.mxu1 }
 0x297   :  { %v2689_v15 = vpop.f32.mrf.mxu2  ;;  %v2702_v11 = vpop.f32.mrf.mxu3 }
 0x298   :  { %v2690_v19 = vadd.f32 %v2689_v15, %v1013_v16 }
 0x29a   :  { %v2703_v23 = vadd.f32 %v2702_v11, %v2690_v19 }
 0x29f   :  { %v2691_v21 = vpop.f32.mrf.mxu2  ;;  %v2704_v22 = vpop.f32.mrf.mxu3 }
 0x2a4   :  { %v2715_v24 = vpop.f32.mrf.mxu0  ;;  %v2728_v51 = vpop.f32.mrf.mxu1 }
 0x2a5   :  { %v2716_v52 = vadd.f32 %v2715_v24, %v2703_v23 }
 0x2a7   :  { %v2729_v20 = vadd.f32 %v2728_v51, %v2716_v52 }
 0x2a9   :  { %v2735_v26 = vpack.c.bf16 %v2729_v20, %v2677_v25 }
 0x2ab   :  { %v2742_v27 = vunpack.c.l.bf16 %v2735_v26  ;;  %v2743_v28 = vunpack.c.h.bf16 %v2735_v26 }
 0x2ac   :  { %v2717_v12 = vpop.f32.mrf.mxu0  ;;  %v2730_v30 = vpop.f32.mrf.mxu1 }
 0x2ad   :  { %vm2750_vm3 = vcmp.gt.f32.partialorder %v2742_v27, 0.0  ;;  %vm2751_vm4 = vcmp.gt.f32.partialorder %v2743_v28, 0.0  ;;  %v2758_v29 = vmul.f32 0.20019531, %v2742_v27  ;;  %v2759_v31 = vmul.f32 0.20019531, %v2743_v28 }
 0x2ae   :  { %vm2767_vm5 = vmpackc.low %vm2751_vm4, %vm2750_vm3 }
 0x2af   :  { %v2763_v6 = vpack.c.bf16 %v2759_v31, %v2758_v29 }
 0x2b1   :  { %v2771_v49 = vsel %vm2767_vm5, %v2735_v26, %v2763_v6 }
 0x2b2   :  { %v2914_v32 = vunpack.c.l.b16 %v2771_v49  ;;  %v2915_v33 = vunpack.c.h.b16 %v2771_v49 }
 0x2b4   :  { %v2922_v34 = vpack.c.b16 %v2914_v32, %v2914_v32  ;;  %v2923_v1 = vpack.c.b16 %v2915_v33, %v2915_v33 }
 0x2b6   :  { %3402 = vmatmul.bf16.vlgmr.msra.gmra.mxu0 %v2922_v34  ;;  %3415 = vmatmul.bf16.vlgmr.msra.gmra.mxu1 %v2923_v1 }
 0x2b7   :  { %v3325_v36 = vpop.f32.mrf.mxu2  ;;  %v3338_v45 = vpop.f32.mrf.mxu3 }
 0x2b8   :  { %v3326_v37 = vadd.f32 %v5403_v35, %v3325_v36 }
 0x2ba   :  { %v3339_v38 = vadd.f32 %v3338_v45, %v3326_v37 }
 0x2bf   :  { %v3327_v39 = vpop.f32.mrf.mxu2  ;;  %v3340_v7 = vpop.f32.mrf.mxu3 }
 0x2c2   :  { %v3351_v42 = vpop.f32.mrf.mxu0  ;;  %v3364_v8 = vpop.f32.mrf.mxu1 }
 0x2c3   :  { %v3352_v43 = vadd.f32 %v3351_v42, %v3339_v38 }
 0x2c5   :  { %v3365_v2 = vadd.f32 %v3364_v8, %v3352_v43 }
 0x2ca   :  { %v3353_v50 = vpop.f32.mrf.mxu0  ;;  %v3366_v44 = vpop.f32.mrf.mxu1 }
 0x2f9   :  { %v3377_v40 = vpop.f32.mrf.mxu2  ;;  %v3390_v47 = vpop.f32.mrf.mxu3 }
 0x2fa   :  { %v3378_v53 = vadd.f32 %v3377_v40, %v3365_v2 }
 0x2fc   :  { %v3391_v46 = vadd.f32 %v3390_v47, %v3378_v53 }
 0x301   :  { %v3379_v41 = vpop.f32.mrf.mxu2  ;;  %v3392_v48 = vpop.f32.mrf.mxu3 }
 0x333   :  { %v3403_v54 = vpop.f32.mrf.mxu0  ;;  %v3416_v55 = vpop.f32.mrf.mxu1 }
 0x334   :  { %v3404_v56 = vadd.f32 %v3403_v54, %v3391_v46 }
 0x336   :  { %v3417_v57 = vadd.f32 %v3416_v55, %v3404_v56 }
 0x338   :  { %5404 = vtanh.f32 %v3417_v57 }
 0x33b   :  { %v3405_v58 = vpop.f32.mrf.mxu0  ;;  %v3418_v59 = vpop.f32.mrf.mxu1 }
 0x33e   :  { %v5405_v60 = vpop.eup %5404 }
 0x33f   :  { %v3421_v61 = vpack.c.bf16 %v5405_v60, %v5405_v60 }
 0x341   :  { %3422 = vst [vmem:[#allocation16] sm:$0xf] %v3421_v61 }
 0x342   :  { %3433 = dma.vmem_to_hbm [thread:$0]  %s3429_s28, 64, %s3431_s10, [#allocation4]  }
 0x343   :  { %5632 = dma.done.wait [#allocation4], 64  }
 0x344   :  { %5633 = vsyncadd [#allocation4], 4294967232 }
 0x345   :  { %3438 = vsyncpa [#allocation3], 1 }
 0x346   :  { %3439 = vsyncpa [#allocation6], 1 }
 0x347   :  { %3440 = vsyncpa [#allocation9], 1 }
 0x348   :  { %3441 = vsyncpa [#allocation12], 1 }
 0x349   :  { %3442 = vsyncpa [#allocation15], 1 }
 0x34a   :  { %3443 = vsyncpa [#allocation4], 1 }

</bundles_post_ra>
